<compile_context>
chip_gen: v7x
topology: tpu7x:2x2x1
jax: 0.10.0
libtpu: 0.0.40
codegen_flags: <defaults>
</compile_context>

<pallas_src>
import functools

import jax
import jax.numpy as jnp
from jax import lax
from jax.experimental import pallas as pl
from jax.experimental.pallas import tpu as pltpu


CFG = dict(
    image_size=16,
    patch=8,
    channels=3,
    hidden=128,          # multiple of 128 -> lane-dense activations & outputs
    heads=2,
    intermediate=256,
    layers=2,
    adapter_reduction=4,
    adapter_ratio=0.2,
    eps=1e-5,
)


# ---------------------------------------------------------------------------
# In-kernel helpers (all f32 elementwise math)
# ---------------------------------------------------------------------------

def _ln(x, g, b, eps):
    mean = jnp.mean(x, axis=-1, keepdims=True)
    var = jnp.mean(jnp.square(x - mean), axis=-1, keepdims=True)
    return (x - mean) * lax.rsqrt(var + eps) * g + b


def _quick_gelu(x):  # HF QuickGELU: x * sigmoid(1.702 x)
    return x * jax.nn.sigmoid(1.702 * x)


def _bf16(x):
    return x.astype(jnp.bfloat16)


# ---------------------------------------------------------------------------
# Fused kernel body: one (batch-tile, layer) grid step
# ---------------------------------------------------------------------------

def _clip_layer_kernel(
    # inputs ----------------------------------------------------------------
    patches_ref,    # (Bblk*Np, CPP)   f32   per-batch-tile patch rows
    patch_w_ref,    # (CPP, D)         bf16
    emb_bias_ref,   # (S, D)           f32   row0 = cls+pos[0], rows 1.. = pos[1:]
    gvec_ref,       # (8, D)           f32   [pre_g, pre_b, post_g, post_b, ad_b2, ad_b1|0]
    lvec_ref,       # (1, 8, D)        f32   [ln1_g, ln1_b, bo, ln2_g, ln2_b, b2, 0, 0]
    wqkv_ref,       # (1, D, 3D)       bf16
    bqkv_ref,       # (1, 1, 3D)       f32
    wo_ref,         # (1, D, D)        bf16
    w1_ref,         # (1, D, I)        bf16
    b1_ref,         # (1, 1, I)        f32
    w2_ref,         # (1, I, D)        bf16
    ad_w1_ref,      # (D, red)         bf16
    ad_w2_ref,      # (red, D)         bf16
    # outputs ---------------------------------------------------------------
    all_ref,        # (Bblk, S, D)     f32   last_hidden_state tile
    img_ref,        # (Bblk, 1, D)     f32   adapter-blended pooled feats tile
    # scratch ---------------------------------------------------------------
    h_ref,          # (Bblk*S, D)      f32   residual stream, persists across l
    *, batch_block, seq, num_heads, head_dim, hidden, red, eps, scale, ratio,
):
    D = hidden
    S = seq
    Np = S - 1
    l = pl.program_id(1)
    gv = gvec_ref[...]

    # ---- l == 0: row-batched patch embed + CLS/pos + pre-LN into the scratch ----
    @pl.when(l == 0)
    def _():
        pe = jnp.dot(_bf16(patches_ref[...]), patch_w_ref[...],
                     preferred_element_type=jnp.float32)          # (Bblk*Np, D)
        cls_row = _ln(emb_bias_ref[0:1, :], gv[0:1], gv[1:2], eps)  # (1, D)
        for b in range(batch_block):
            h_ref[b * S:b * S + 1, :] = cls_row
            h_ref[b * S + 1:(b + 1) * S, :] = _ln(
                pe[b * Np:(b + 1) * Np, :] + emb_bias_ref[1:, :],
                gv[0:1], gv[1:2], eps)

    lv = lvec_ref[0]           # (8, D)
    wo = wo_ref[0]             # (D, D) bf16
    h = h_ref[...]             # (M, D) f32 residual stream, M = Bblk*S

    # ---- self-attention block (row-batched QKV, per-head W_o accumulation) ----
    hn = _ln(h, lv[0:1], lv[1:2], eps)
    qkv = jnp.dot(_bf16(hn), wqkv_ref[0],
                  preferred_element_type=jnp.float32) + bqkv_ref[0]   # (M, 3D)

    # TODO(synk): at production sizes replace the Python image/head loops with a single
    # batched dot_general over an (images, heads) axis to avoid trace-time unrolling.
    attn_rows = []
    for b in range(batch_block):
        qkv_b = qkv[b * S:(b + 1) * S, :]                       # (S, 3D)
        o_b = None
        for hd in range(num_heads):
            off = hd * head_dim
            q = _bf16(qkv_b[:, off:off + head_dim] * scale)
            k = _bf16(qkv_b[:, D + off:D + off + head_dim])
            v = _bf16(qkv_b[:, 2 * D + off:2 * D + off + head_dim])
            s = lax.dot_general(q, k, (((1,), (1,)), ((), ())),
                                preferred_element_type=jnp.float32)   # (S, S)
            s = s - jnp.max(s, axis=-1, keepdims=True)
            p = jnp.exp(s)
            p = p / jnp.sum(p, axis=-1, keepdims=True)                # exact softmax
            pv = jnp.dot(_bf16(p), v,
                         preferred_element_type=jnp.float32)          # (S, Dh)
            # fold the head back via a sublane row-slice of W_o (no lane concat)
            proj = jnp.dot(_bf16(pv), wo[off:off + head_dim, :],
                           preferred_element_type=jnp.float32)        # (S, D)
            o_b = proj if o_b is None else o_b + proj
        attn_rows.append(o_b)
    attn = (jnp.concatenate(attn_rows, axis=0)
            if batch_block > 1 else attn_rows[0])                     # (M, D)
    h = h + attn + lv[2:3]                                            # +out-proj bias

    # ---- MLP block (quick_gelu) with fused residual ----
    hn2 = _ln(h, lv[3:4], lv[4:5], eps)
    hm = _quick_gelu(jnp.dot(_bf16(hn2), w1_ref[0],
                             preferred_element_type=jnp.float32) + b1_ref[0])
    h = h + jnp.dot(_bf16(hm), w2_ref[0],
                    preferred_element_type=jnp.float32) + lv[5:6]
    h_ref[...] = h

    # ---- last layer: emit last_hidden_state, post-LN(CLS), adapter blend ----
    @pl.when(l == pl.num_programs(1) - 1)
    def _():
        for b in range(batch_block):
            all_ref[b, :, :] = h[b * S:(b + 1) * S, :].astype(all_ref.dtype)
        cls_rows = (jnp.concatenate(
            [h[b * S:b * S + 1, :] for b in range(batch_block)], axis=0)
            if batch_block > 1 else h[0:1, :])                        # (Bblk, D)
        pooled = _ln(cls_rows, gv[2:3], gv[3:4], eps)
        # CLIP-Adapter: Linear -> ReLU -> Linear -> ReLU, then ratio blend
        a = jnp.maximum(
            jnp.dot(_bf16(pooled), ad_w1_ref[...],
                    preferred_element_type=jnp.float32) + gv[5:6, :red], 0.0)
        a = jnp.maximum(
            jnp.dot(_bf16(a), ad_w2_ref[...],
                    preferred_element_type=jnp.float32) + gv[4:5, :], 0.0)
        img = ratio * a + (1.0 - ratio) * pooled                      # (Bblk, D)
        for b in range(batch_block):
            img_ref[b, :, :] = img[b:b + 1, :].astype(img_ref.dtype)


# ---------------------------------------------------------------------------
# Parameter init (deterministic, synthetic — stands in for from_pretrained)
# ---------------------------------------------------------------------------

def init_params(key, cfg):
    D, P, C = cfg["hidden"], cfg["patch"], cfg["channels"]
    I = cfg["intermediate"]
    L = cfg["layers"]
    Np = (cfg["image_size"] // P) ** 2
    red = D // cfg["adapter_reduction"]
    bf = jnp.bfloat16

    keys = iter(jax.random.split(key, 64))

    def nrm(shape, std=0.02, dtype=jnp.float32):
        return (std * jax.random.normal(next(keys), shape)).astype(dtype)

    params = {
        "patch_w": nrm((C * P * P, D), dtype=bf),   # conv-as-matmul (CLIP conv: no bias)
        "cls": nrm((D,)),
        "pos": nrm((Np + 1, D)),
        "pre_ln_g": jnp.ones((1, D), jnp.float32),
        "pre_ln_b": jnp.zeros((1, D), jnp.float32),
        "post_ln_g": jnp.ones((1, D), jnp.float32),
        "post_ln_b": jnp.zeros((1, D), jnp.float32),
        # CLIP-Adapter: Linear(D, D/4) -> ReLU -> Linear(D/4, D) -> ReLU
        "ad_w1": nrm((D, red), dtype=bf),
        "ad_b1": nrm((1, red)),
        "ad_w2": nrm((red, D), dtype=bf),
        "ad_b2": nrm((1, D)),
        # encoder layers, stacked along a leading L axis; QKV fused
        "layers": {
            "ln1_g": jnp.ones((L, D), jnp.float32),
            "ln1_b": jnp.zeros((L, D), jnp.float32),
            "wqkv": nrm((L, D, 3 * D), dtype=bf),
            "bqkv": nrm((L, 1, 3 * D)),
            "wo": nrm((L, D, D), dtype=bf),
            "bo": nrm((L, D)),
            "ln2_g": jnp.ones((L, D), jnp.float32),
            "ln2_b": jnp.zeros((L, D), jnp.float32),
            "w1": nrm((L, D, I), dtype=bf),
            "b1": nrm((L, 1, I)),
            "w2": nrm((L, I, D), dtype=bf),
            "b2": nrm((L, D)),
        },
    }
    return params


# ---------------------------------------------------------------------------
# Forward pass: one pallas_call, grid = (batch_tiles, layers)
# ---------------------------------------------------------------------------

def clip_image_model_forward(x, params, cfg, *, batch_block=None):
    """Replicates CLIPImageModel.forward -> (image_feats, all_feats).

    x: (B, C, H, W) float32, NCHW (PyTorch convention).
    """
    B, C, H, W = x.shape
    P, D, Hh = cfg["patch"], cfg["hidden"], cfg["heads"]
    I = cfg["intermediate"]
    L = cfg["layers"]
    Dh = D // Hh
    Hp, Wp = H // P, W // P
    Np = Hp * Wp
    S = Np + 1
    CPP = C * P * P
    red = D // cfg["adapter_reduction"]

    Bblk = B if batch_block is None else batch_block
    assert B % Bblk == 0, "batch must divide evenly into batch tiles"
    assert (Bblk * Np) % 8 == 0 or Bblk * Np == B * Np, "patch-row block not sublane-friendly"
    Bt = B // Bblk

    # Patchify NCHW -> (B*Np, C*P*P): flat rows so the kernel row-batches the embed matmul.
    # TODO(synk): fold this transpose into the kernel via an Element/strided index map at
    # real 224x224 inputs to avoid one extra HBM round trip of the image tensor.
    patches = (x.reshape(B, C, Hp, P, Wp, P)
                 .transpose(0, 2, 4, 1, 3, 5)
                 .reshape(B * Np, CPP)).astype(jnp.float32)

    # Fold CLS token into row 0 of the positional table.
    emb_bias = params["pos"].at[0].add(params["cls"])              # (S, D) f32

    # Pack the tiny (1, D) vectors into two lane/sublane-dense slabs (one DMA each
    # instead of ~14 padded (1, D) descriptors).  In a real deployment these would be
    # packed once at weight-load time.
    zD = jnp.zeros((1, D), jnp.float32)
    ad_b1_pad = jnp.zeros((1, D), jnp.float32).at[:, :red].set(params["ad_b1"])
    gvec = jnp.concatenate(
        [params["pre_ln_g"], params["pre_ln_b"],
         params["post_ln_g"], params["post_ln_b"],
         params["ad_b2"], ad_b1_pad, zD, zD], axis=0)              # (8, D)
    lp = params["layers"]
    zLD = jnp.zeros((L, D), jnp.float32)
    lvec = jnp.stack(
        [lp["ln1_g"], lp["ln1_b"], lp["bo"],
         lp["ln2_g"], lp["ln2_b"], lp["b2"], zLD, zLD], axis=1)    # (L, 8, D)

    kernel = functools.partial(
        _clip_layer_kernel,
        batch_block=Bblk, seq=S, num_heads=Hh, head_dim=Dh, hidden=D,
        red=red, eps=cfg["eps"], scale=float(Dh) ** -0.5, ratio=cfg["adapter_ratio"],
    )

    const2 = lambda shape: pl.BlockSpec(shape, lambda bt, l: (0, 0))
    layer3 = lambda shape: pl.BlockSpec(shape, lambda bt, l: (l, 0, 0))

    all_feats, img3 = pl.pallas_call(
        kernel,
        out_shape=(
            jax.ShapeDtypeStruct((B, S, D), jnp.float32),   # last_hidden_state
            jax.ShapeDtypeStruct((B, 1, D), jnp.float32),   # adapter-blended pooled feats
        ),
        grid=(Bt, L),
        in_specs=[
            pl.BlockSpec((Bblk * Np, CPP), lambda bt, l: (bt, 0)),   # patch rows
            const2((CPP, D)),                                        # patch_w   (bf16)
            const2((S, D)),                                          # emb_bias
            const2((8, D)),                                          # packed global vecs
            layer3((1, 8, D)),                                       # packed per-layer vecs
            layer3((1, D, 3 * D)),                                   # wqkv      (bf16)
            layer3((1, 1, 3 * D)),                                   # bqkv
            layer3((1, D, D)),                                       # wo        (bf16)
            layer3((1, D, I)),                                       # w1        (bf16)
            layer3((1, 1, I)),                                       # b1
            layer3((1, I, D)),                                       # w2        (bf16)
            const2((D, red)),                                        # ad_w1     (bf16)
            const2((red, D)),                                        # ad_w2     (bf16)
        ],
        out_specs=(
            pl.BlockSpec((Bblk, S, D), lambda bt, l: (bt, 0, 0)),
            pl.BlockSpec((Bblk, 1, D), lambda bt, l: (bt, 0, 0)),
        ),
        scratch_shapes=[pltpu.VMEM((Bblk * S, D), jnp.float32)],     # residual stream
        compiler_params=pltpu.CompilerParams(
            # batch tiles parallel (v7x megacore), layer axis sequential (carried scratch)
            dimension_semantics=("parallel", "arbitrary"),
            vmem_limit_bytes=32 * 1024 * 1024,   # raise/tune when scaling to real CLIP dims
        ),
    )(
        patches, params["patch_w"], emb_bias, gvec, lvec,
        lp["wqkv"], lp["bqkv"], lp["wo"], lp["w1"], lp["b1"], lp["w2"],
        params["ad_w1"], params["ad_w2"],
    )

    return img3.reshape(B, D), all_feats


# ---------------------------------------------------------------------------
# Pure-JAX reference (mirrors the kernel's bf16 matmul operands, f32 accumulate)
# ---------------------------------------------------------------------------

def clip_forward_reference(x, params, cfg):
    B, C, H, W = x.shape
    P, D, Hh = cfg["patch"], cfg["hidden"], cfg["heads"]
    L = cfg["layers"]
    Dh = D // Hh
    Hp, Wp = H // P, W // P
    Np = Hp * Wp
    S = Np + 1
    eps = cfg["eps"]
    bf, f32 = jnp.bfloat16, jnp.float32

    def ln(t, g, b):
        m = jnp.mean(t, -1, keepdims=True)
        v = jnp.mean(jnp.square(t - m), -1, keepdims=True)
        return (t - m) * lax.rsqrt(v + eps) * g + b

    def mm(a, w):
        return jnp.dot(a.astype(bf), w.astype(bf), preferred_element_type=f32)

    patches = (x.reshape(B, C, Hp, P, Wp, P)
                 .transpose(0, 2, 4, 1, 3, 5)
                 .reshape(B, Np, C * P * P)).astype(f32)
    emb = mm(patches, params["patch_w"])
    cls = jnp.broadcast_to(params["cls"][None, None, :], (B, 1, D))
    h = jnp.concatenate([cls, emb], axis=1) + params["pos"][None]
    h = ln(h, params["pre_ln_g"], params["pre_ln_b"])

    scale = float(Dh) ** -0.5
    lp = params["layers"]
    for l in range(L):
        hn = ln(h, lp["ln1_g"][l], lp["ln1_b"][l])
        qkv = mm(hn, lp["wqkv"][l]) + lp["bqkv"][l]
        q, k, v = jnp.split(qkv, 3, axis=-1)
        sh = lambda t: t.reshape(B, S, Hh, Dh).transpose(0, 2, 1, 3)
        q, k, v = sh(q * scale).astype(bf), sh(k).astype(bf), sh(v).astype(bf)
        s = jnp.einsum("bhqd,bhkd->bhqk", q, k, preferred_element_type=f32)
        s = s - jnp.max(s, -1, keepdims=True)
        p = jnp.exp(s)
        p = p / jnp.sum(p, -1, keepdims=True)
        o = jnp.einsum("bhqk,bhkd->bhqd", p.astype(bf), v, preferred_element_type=f32)
        o = o.transpose(0, 2, 1, 3).reshape(B, S, D)
        h = h + mm(o, lp["wo"][l]) + lp["bo"][l]

        hn = ln(h, lp["ln2_g"][l], lp["ln2_b"][l])
        hm = mm(hn, lp["w1"][l]) + lp["b1"][l]
        hm = hm * jax.nn.sigmoid(1.702 * hm)
        h = h + mm(hm, lp["w2"][l]) + lp["b2"][l]

    all_feats = h
    pooled = ln(h[:, 0, :], params["post_ln_g"], params["post_ln_b"])
    a = jnp.maximum(mm(pooled, params["ad_w1"]) + params["ad_b1"], 0.0)
    a = jnp.maximum(mm(a, params["ad_w2"]) + params["ad_b2"], 0.0)
    ratio = cfg["adapter_ratio"]
    return ratio * a + (1.0 - ratio) * pooled, all_feats


# ---------------------------------------------------------------------------
# Driver
# ---------------------------------------------------------------------------

if __name__ == "__main__":
    key = jax.random.PRNGKey(0)
    k_x, k_params = jax.random.split(key)

    B = 4
    x = jax.random.normal(
        k_x, (B, CFG["channels"], CFG["image_size"], CFG["image_size"]), jnp.float32
    )
    params = init_params(k_params, CFG)

    # 2 images per grid step (row-batched M = 2*S), 2 batch tiles -> 2 parallel steps.
    image_feats, all_feats = clip_image_model_forward(x, params, CFG, batch_block=2)
    jax.block_until_ready((image_feats, all_feats))

    Np = (CFG["image_size"] // CFG["patch"]) ** 2
    S = Np + 1
    assert image_feats.shape == (B, CFG["hidden"])
    assert all_feats.shape == (B, S, CFG["hidden"])
    assert bool(jnp.all(jnp.isfinite(image_feats)))
    assert bool(jnp.all(jnp.isfinite(all_feats)))

    # Correctness vs a pure-JAX reference that uses the same bf16 matmul operands.
    ref_img, ref_all = clip_forward_reference(x, params, CFG)
    assert bool(jnp.allclose(all_feats, ref_all, rtol=2e-2, atol=2e-2)), (
        float(jnp.max(jnp.abs(all_feats - ref_all))))
    assert bool(jnp.allclose(image_feats, ref_img, rtol=2e-2, atol=2e-2)), (
        float(jnp.max(jnp.abs(image_feats - ref_img))))

    print("KERNEL_OK")
</pallas_src>

<mosaic_0001>
module attributes {stable_mosaic.version = 11 : i64} {
  func.func @_clip_layer_kernel(%arg0: i32, %arg1: i32, %arg2: memref<8x192xf32, #tpu.memory_space<vmem>>, %arg3: memref<192x128xbf16, #tpu.memory_space<vmem>>, %arg4: memref<5x128xf32, #tpu.memory_space<vmem>>, %arg5: memref<8x128xf32, #tpu.memory_space<vmem>>, %arg6: memref<1x8x128xf32, #tpu.memory_space<vmem>>, %arg7: memref<1x128x384xbf16, #tpu.memory_space<vmem>>, %arg8: memref<1x1x384xf32, #tpu.memory_space<vmem>>, %arg9: memref<1x128x128xbf16, #tpu.memory_space<vmem>>, %arg10: memref<1x128x256xbf16, #tpu.memory_space<vmem>>, %arg11: memref<1x1x256xf32, #tpu.memory_space<vmem>>, %arg12: memref<1x256x128xbf16, #tpu.memory_space<vmem>>, %arg13: memref<128x32xbf16, #tpu.memory_space<vmem>>, %arg14: memref<32x128xbf16, #tpu.memory_space<vmem>>, %arg15: memref<2x5x128xf32, #tpu.memory_space<vmem>>, %arg16: memref<2x1x128xf32, #tpu.memory_space<vmem>>, %arg17: memref<10x128xf32, #tpu.memory_space<vmem>>) attributes {dimension_semantics = [#tpu.dimension_semantics<parallel>, #tpu.dimension_semantics<arbitrary>], iteration_bounds = array<i64: 2, 2>, scalar_prefetch = 0 : i64, scratch_operands = 1 : i64, tpu.core_type = #tpu.core_type<tc>, window_params = [{transform_indices = @transform_0, window_bounds = array<i64: 8, 192>}, {pipeline_mode = #tpu.pipeline_mode<synchronous>, transform_indices = @transform_1, window_bounds = array<i64: 192, 128>}, {pipeline_mode = #tpu.pipeline_mode<synchronous>, transform_indices = @transform_2, window_bounds = array<i64: 5, 128>}, {pipeline_mode = #tpu.pipeline_mode<synchronous>, transform_indices = @transform_3, window_bounds = array<i64: 8, 128>}, {transform_indices = @transform_4, window_bounds = array<i64: 1, 8, 128>}, {transform_indices = @transform_5, window_bounds = array<i64: 1, 128, 384>}, {transform_indices = @transform_6, window_bounds = array<i64: 1, 1, 384>}, {transform_indices = @transform_7, window_bounds = array<i64: 1, 128, 128>}, {transform_indices = @transform_8, window_bounds = array<i64: 1, 128, 256>}, {transform_indices = @transform_9, window_bounds = array<i64: 1, 1, 256>}, {transform_indices = @transform_10, window_bounds = array<i64: 1, 256, 128>}, {pipeline_mode = #tpu.pipeline_mode<synchronous>, transform_indices = @transform_11, window_bounds = array<i64: 128, 32>}, {pipeline_mode = #tpu.pipeline_mode<synchronous>, transform_indices = @transform_12, window_bounds = array<i64: 32, 128>}, {transform_indices = @transform_13, window_bounds = array<i64: 2, 5, 128>}, {transform_indices = @transform_14, window_bounds = array<i64: 2, 1, 128>}]} {
    %c0 = arith.constant 0 : index
    %c0_0 = arith.constant 0 : index
    %0 = vector.load %arg5[%c0, %c0_0] : memref<8x128xf32, #tpu.memory_space<vmem>>, vector<8x128xf32>
    %c0_i32 = arith.constant 0 : i32
    %1 = arith.cmpi eq, %arg1, %c0_i32 : i32
    %2 = arith.extui %1 : i1 to i32
    %c0_i32_1 = arith.constant 0 : i32
    %3 = arith.cmpi ne, %2, %c0_i32_1 : i32
    scf.if %3 {
      %c0_66 = arith.constant 0 : index
      %c0_67 = arith.constant 0 : index
      %194 = vector.load %arg2[%c0_66, %c0_67] : memref<8x192xf32, #tpu.memory_space<vmem>>, vector<8x192xf32>
      %195 = arith.truncf %194 : vector<8x192xf32> to vector<8x192xbf16>
      %c0_68 = arith.constant 0 : index
      %c0_69 = arith.constant 0 : index
      %196 = vector.load %arg3[%c0_68, %c0_69] : memref<192x128xbf16, #tpu.memory_space<vmem>>, vector<192x128xbf16>
      %cst_70 = arith.constant dense<0.000000e+00> : vector<8x128xf32>
      %197 = tpu.matmul %195, %196, %cst_70 {dimension_numbers = #tpu.dot_dimension_numbers<[1], [0], [0], [1], [0, 0, 1, 1], [], []>} : vector<8x192xbf16>, vector<192x128xbf16>, vector<8x128xf32> -> vector<8x128xf32>
      %c0_71 = arith.constant 0 : index
      %c0_72 = arith.constant 0 : index
      %198 = vector.load %arg4[%c0_71, %c0_72] : memref<5x128xf32, #tpu.memory_space<vmem>>, vector<1x128xf32>
      %199 = vector.extract_strided_slice %0 {offsets = [0, 0], sizes = [1, 128], strides = [1, 1]} : vector<8x128xf32> to vector<1x128xf32>
      %200 = vector.extract_strided_slice %0 {offsets = [1, 0], sizes = [1, 128], strides = [1, 1]} : vector<8x128xf32> to vector<1x128xf32>
      %cst_73 = arith.constant dense<0.000000e+00> : vector<1xf32>
      %201 = vector.multi_reduction <add>, %198, %cst_73 [1] : vector<1x128xf32> to vector<1xf32>
      %202 = vector.shape_cast %201 : vector<1xf32> to vector<1x1xf32>
      %cst_74 = arith.constant 1.280000e+02 : f32
      %203 = vector.broadcast %cst_74 : f32 to vector<1x1xf32>
      %204 = arith.divf %202, %203 : vector<1x1xf32>
      %205 = vector.broadcast %204 : vector<1x1xf32> to vector<1x128xf32>
      %206 = arith.subf %198, %205 : vector<1x128xf32>
      %207 = arith.mulf %206, %206 : vector<1x128xf32>
      %cst_75 = arith.constant dense<0.000000e+00> : vector<1xf32>
      %208 = vector.multi_reduction <add>, %207, %cst_75 [1] : vector<1x128xf32> to vector<1xf32>
      %209 = vector.shape_cast %208 : vector<1xf32> to vector<1x1xf32>
      %cst_76 = arith.constant 1.280000e+02 : f32
      %210 = vector.broadcast %cst_76 : f32 to vector<1x1xf32>
      %211 = arith.divf %209, %210 : vector<1x1xf32>
      %212 = vector.broadcast %204 : vector<1x1xf32> to vector<1x128xf32>
      %213 = arith.subf %198, %212 : vector<1x128xf32>
      %cst_77 = arith.constant 9.99999974E-6 : f32
      %214 = vector.broadcast %cst_77 : f32 to vector<1x1xf32>
      %215 = arith.addf %211, %214 : vector<1x1xf32>
      %216 = math.rsqrt %215 : vector<1x1xf32>
      %217 = vector.broadcast %216 : vector<1x1xf32> to vector<1x128xf32>
      %218 = arith.mulf %213, %217 : vector<1x128xf32>
      %219 = arith.mulf %218, %199 : vector<1x128xf32>
      %220 = arith.addf %219, %200 : vector<1x128xf32>
      %c0_78 = arith.constant 0 : index
      %c0_79 = arith.constant 0 : index
      %221 = vector.load %arg17[%c0_78, %c0_79] : memref<10x128xf32, #tpu.memory_space<vmem>>, vector<1x128xf32>
      tpu.vector_store %arg17[%c0_78, %c0_79], %220 {strides = array<i32>} : memref<10x128xf32, #tpu.memory_space<vmem>>, vector<1x128xf32>,
      %222 = vector.extract_strided_slice %197 {offsets = [0, 0], sizes = [4, 128], strides = [1, 1]} : vector<8x128xf32> to vector<4x128xf32>
      %c1 = arith.constant 1 : index
      %c0_80 = arith.constant 0 : index
      %223 = vector.load %arg4[%c1, %c0_80] : memref<5x128xf32, #tpu.memory_space<vmem>>, vector<4x128xf32>
      %224 = arith.addf %222, %223 : vector<4x128xf32>
      %225 = vector.extract_strided_slice %0 {offsets = [0, 0], sizes = [1, 128], strides = [1, 1]} : vector<8x128xf32> to vector<1x128xf32>
      %226 = vector.extract_strided_slice %0 {offsets = [1, 0], sizes = [1, 128], strides = [1, 1]} : vector<8x128xf32> to vector<1x128xf32>
      %cst_81 = arith.constant dense<0.000000e+00> : vector<4xf32>
      %227 = vector.multi_reduction <add>, %224, %cst_81 [1] : vector<4x128xf32> to vector<4xf32>
      %228 = vector.shape_cast %227 : vector<4xf32> to vector<4x1xf32>
      %cst_82 = arith.constant 1.280000e+02 : f32
      %229 = vector.broadcast %cst_82 : f32 to vector<4x1xf32>
      %230 = arith.divf %228, %229 : vector<4x1xf32>
      %231 = vector.broadcast %230 : vector<4x1xf32> to vector<4x128xf32>
      %232 = arith.subf %224, %231 : vector<4x128xf32>
      %233 = arith.mulf %232, %232 : vector<4x128xf32>
      %cst_83 = arith.constant dense<0.000000e+00> : vector<4xf32>
      %234 = vector.multi_reduction <add>, %233, %cst_83 [1] : vector<4x128xf32> to vector<4xf32>
      %235 = vector.shape_cast %234 : vector<4xf32> to vector<4x1xf32>
      %cst_84 = arith.constant 1.280000e+02 : f32
      %236 = vector.broadcast %cst_84 : f32 to vector<4x1xf32>
      %237 = arith.divf %235, %236 : vector<4x1xf32>
      %238 = vector.broadcast %230 : vector<4x1xf32> to vector<4x128xf32>
      %239 = arith.subf %224, %238 : vector<4x128xf32>
      %cst_85 = arith.constant 9.99999974E-6 : f32
      %240 = vector.broadcast %cst_85 : f32 to vector<4x1xf32>
      %241 = arith.addf %237, %240 : vector<4x1xf32>
      %242 = math.rsqrt %241 : vector<4x1xf32>
      %243 = vector.broadcast %242 : vector<4x1xf32> to vector<4x128xf32>
      %244 = arith.mulf %239, %243 : vector<4x128xf32>
      %245 = vector.broadcast %225 : vector<1x128xf32> to vector<4x128xf32>
      %246 = arith.mulf %244, %245 : vector<4x128xf32>
      %247 = vector.broadcast %226 : vector<1x128xf32> to vector<4x128xf32>
      %248 = arith.addf %246, %247 : vector<4x128xf32>
      %c1_86 = arith.constant 1 : index
      %c0_87 = arith.constant 0 : index
      %249 = vector.load %arg17[%c1_86, %c0_87] : memref<10x128xf32, #tpu.memory_space<vmem>>, vector<4x128xf32>
      tpu.vector_store %arg17[%c1_86, %c0_87], %248 {strides = array<i32>} : memref<10x128xf32, #tpu.memory_space<vmem>>, vector<4x128xf32>,
      %c5 = arith.constant 5 : index
      %c0_88 = arith.constant 0 : index
      %250 = vector.load %arg17[%c5, %c0_88] : memref<10x128xf32, #tpu.memory_space<vmem>>, vector<1x128xf32>
      tpu.vector_store %arg17[%c5, %c0_88], %220 {strides = array<i32>} : memref<10x128xf32, #tpu.memory_space<vmem>>, vector<1x128xf32>,
      %251 = vector.extract_strided_slice %197 {offsets = [4, 0], sizes = [4, 128], strides = [1, 1]} : vector<8x128xf32> to vector<4x128xf32>
      %c1_89 = arith.constant 1 : index
      %c0_90 = arith.constant 0 : index
      %252 = vector.load %arg4[%c1_89, %c0_90] : memref<5x128xf32, #tpu.memory_space<vmem>>, vector<4x128xf32>
      %253 = arith.addf %251, %252 : vector<4x128xf32>
      %254 = vector.extract_strided_slice %0 {offsets = [0, 0], sizes = [1, 128], strides = [1, 1]} : vector<8x128xf32> to vector<1x128xf32>
      %255 = vector.extract_strided_slice %0 {offsets = [1, 0], sizes = [1, 128], strides = [1, 1]} : vector<8x128xf32> to vector<1x128xf32>
      %cst_91 = arith.constant dense<0.000000e+00> : vector<4xf32>
      %256 = vector.multi_reduction <add>, %253, %cst_91 [1] : vector<4x128xf32> to vector<4xf32>
      %257 = vector.shape_cast %256 : vector<4xf32> to vector<4x1xf32>
      %cst_92 = arith.constant 1.280000e+02 : f32
      %258 = vector.broadcast %cst_92 : f32 to vector<4x1xf32>
      %259 = arith.divf %257, %258 : vector<4x1xf32>
      %260 = vector.broadcast %259 : vector<4x1xf32> to vector<4x128xf32>
      %261 = arith.subf %253, %260 : vector<4x128xf32>
      %262 = arith.mulf %261, %261 : vector<4x128xf32>
      %cst_93 = arith.constant dense<0.000000e+00> : vector<4xf32>
      %263 = vector.multi_reduction <add>, %262, %cst_93 [1] : vector<4x128xf32> to vector<4xf32>
      %264 = vector.shape_cast %263 : vector<4xf32> to vector<4x1xf32>
      %cst_94 = arith.constant 1.280000e+02 : f32
      %265 = vector.broadcast %cst_94 : f32 to vector<4x1xf32>
      %266 = arith.divf %264, %265 : vector<4x1xf32>
      %267 = vector.broadcast %259 : vector<4x1xf32> to vector<4x128xf32>
      %268 = arith.subf %253, %267 : vector<4x128xf32>
      %cst_95 = arith.constant 9.99999974E-6 : f32
      %269 = vector.broadcast %cst_95 : f32 to vector<4x1xf32>
      %270 = arith.addf %266, %269 : vector<4x1xf32>
      %271 = math.rsqrt %270 : vector<4x1xf32>
      %272 = vector.broadcast %271 : vector<4x1xf32> to vector<4x128xf32>
      %273 = arith.mulf %268, %272 : vector<4x128xf32>
      %274 = vector.broadcast %254 : vector<1x128xf32> to vector<4x128xf32>
      %275 = arith.mulf %273, %274 : vector<4x128xf32>
      %276 = vector.broadcast %255 : vector<1x128xf32> to vector<4x128xf32>
      %277 = arith.addf %275, %276 : vector<4x128xf32>
      %c6 = arith.constant 6 : index
      %c0_96 = arith.constant 0 : index
      %278 = vector.load %arg17[%c6, %c0_96] : memref<10x128xf32, #tpu.memory_space<vmem>>, vector<4x128xf32>
      tpu.vector_store %arg17[%c6, %c0_96], %277 {strides = array<i32>} : memref<10x128xf32, #tpu.memory_space<vmem>>, vector<4x128xf32>,
    } else {
    }
    %c0_2 = arith.constant 0 : index
    %c0_3 = arith.constant 0 : index
    %c0_4 = arith.constant 0 : index
    %4 = vector.load %arg6[%c0_2, %c0_3, %c0_4] : memref<1x8x128xf32, #tpu.memory_space<vmem>>, vector<1x8x128xf32>
    %5 = vector.shape_cast %4 : vector<1x8x128xf32> to vector<8x128xf32>
    %c0_5 = arith.constant 0 : index
    %c0_6 = arith.constant 0 : index
    %c0_7 = arith.constant 0 : index
    %6 = vector.load %arg9[%c0_5, %c0_6, %c0_7] : memref<1x128x128xbf16, #tpu.memory_space<vmem>>, vector<1x128x128xbf16>
    %7 = vector.shape_cast %6 : vector<1x128x128xbf16> to vector<128x128xbf16>
    %c0_8 = arith.constant 0 : index
    %c0_9 = arith.constant 0 : index
    %8 = vector.load %arg17[%c0_8, %c0_9] : memref<10x128xf32, #tpu.memory_space<vmem>>, vector<10x128xf32>
    %9 = vector.extract_strided_slice %5 {offsets = [0, 0], sizes = [1, 128], strides = [1, 1]} : vector<8x128xf32> to vector<1x128xf32>
    %10 = vector.extract_strided_slice %5 {offsets = [1, 0], sizes = [1, 128], strides = [1, 1]} : vector<8x128xf32> to vector<1x128xf32>
    %cst = arith.constant dense<0.000000e+00> : vector<10xf32>
    %11 = vector.multi_reduction <add>, %8, %cst [1] : vector<10x128xf32> to vector<10xf32>
    %12 = vector.shape_cast %11 : vector<10xf32> to vector<10x1xf32>
    %cst_10 = arith.constant 1.280000e+02 : f32
    %13 = vector.broadcast %cst_10 : f32 to vector<10x1xf32>
    %14 = arith.divf %12, %13 : vector<10x1xf32>
    %15 = vector.broadcast %14 : vector<10x1xf32> to vector<10x128xf32>
    %16 = arith.subf %8, %15 : vector<10x128xf32>
    %17 = arith.mulf %16, %16 : vector<10x128xf32>
    %cst_11 = arith.constant dense<0.000000e+00> : vector<10xf32>
    %18 = vector.multi_reduction <add>, %17, %cst_11 [1] : vector<10x128xf32> to vector<10xf32>
    %19 = vector.shape_cast %18 : vector<10xf32> to vector<10x1xf32>
    %cst_12 = arith.constant 1.280000e+02 : f32
    %20 = vector.broadcast %cst_12 : f32 to vector<10x1xf32>
    %21 = arith.divf %19, %20 : vector<10x1xf32>
    %22 = vector.broadcast %14 : vector<10x1xf32> to vector<10x128xf32>
    %23 = arith.subf %8, %22 : vector<10x128xf32>
    %cst_13 = arith.constant 9.99999974E-6 : f32
    %24 = vector.broadcast %cst_13 : f32 to vector<10x1xf32>
    %25 = arith.addf %21, %24 : vector<10x1xf32>
    %26 = math.rsqrt %25 : vector<10x1xf32>
    %27 = vector.broadcast %26 : vector<10x1xf32> to vector<10x128xf32>
    %28 = arith.mulf %23, %27 : vector<10x128xf32>
    %29 = vector.broadcast %9 : vector<1x128xf32> to vector<10x128xf32>
    %30 = arith.mulf %28, %29 : vector<10x128xf32>
    %31 = vector.broadcast %10 : vector<1x128xf32> to vector<10x128xf32>
    %32 = arith.addf %30, %31 : vector<10x128xf32>
    %33 = arith.truncf %32 : vector<10x128xf32> to vector<10x128xbf16>
    %c0_14 = arith.constant 0 : index
    %c0_15 = arith.constant 0 : index
    %c0_16 = arith.constant 0 : index
    %34 = vector.load %arg7[%c0_14, %c0_15, %c0_16] : memref<1x128x384xbf16, #tpu.memory_space<vmem>>, vector<1x128x384xbf16>
    %35 = vector.shape_cast %34 : vector<1x128x384xbf16> to vector<128x384xbf16>
    %cst_17 = arith.constant dense<0.000000e+00> : vector<10x384xf32>
    %36 = tpu.matmul %33, %35, %cst_17 {dimension_numbers = #tpu.dot_dimension_numbers<[1], [0], [0], [1], [0, 0, 1, 1], [], []>} : vector<10x128xbf16>, vector<128x384xbf16>, vector<10x384xf32> -> vector<10x384xf32>
    %c0_18 = arith.constant 0 : index
    %c0_19 = arith.constant 0 : index
    %c0_20 = arith.constant 0 : index
    %37 = vector.load %arg8[%c0_18, %c0_19, %c0_20] : memref<1x1x384xf32, #tpu.memory_space<vmem>>, vector<1x1x384xf32>
    %38 = vector.shape_cast %37 : vector<1x1x384xf32> to vector<1x384xf32>
    %39 = vector.broadcast %38 : vector<1x384xf32> to vector<10x384xf32>
    %40 = arith.addf %36, %39 : vector<10x384xf32>
    %41 = vector.extract_strided_slice %40 {offsets = [0, 0], sizes = [5, 384], strides = [1, 1]} : vector<10x384xf32> to vector<5x384xf32>
    %42 = vector.extract_strided_slice %41 {offsets = [0, 0], sizes = [5, 64], strides = [1, 1]} : vector<5x384xf32> to vector<5x64xf32>
    %cst_21 = arith.constant 1.250000e-01 : f32
    %43 = vector.broadcast %cst_21 : f32 to vector<5x64xf32>
    %44 = arith.mulf %42, %43 : vector<5x64xf32>
    %45 = arith.truncf %44 : vector<5x64xf32> to vector<5x64xbf16>
    %46 = vector.extract_strided_slice %41 {offsets = [0, 128], sizes = [5, 64], strides = [1, 1]} : vector<5x384xf32> to vector<5x64xf32>
    %47 = arith.truncf %46 : vector<5x64xf32> to vector<5x64xbf16>
    %48 = vector.extract_strided_slice %41 {offsets = [0, 256], sizes = [5, 64], strides = [1, 1]} : vector<5x384xf32> to vector<5x64xf32>
    %49 = arith.truncf %48 : vector<5x64xf32> to vector<5x64xbf16>
    %cst_22 = arith.constant dense<0.000000e+00> : vector<5x5xf32>
    %50 = tpu.matmul %45, %47, %cst_22 {dimension_numbers = #tpu.dot_dimension_numbers<[1], [1], [0], [0], [0, 0, 1, 0], [], []>} : vector<5x64xbf16>, vector<5x64xbf16>, vector<5x5xf32> -> vector<5x5xf32>
    %cst_23 = arith.constant dense<0xFF800000> : vector<5xf32>
    %51 = vector.multi_reduction <maximumf>, %50, %cst_23 [1] : vector<5x5xf32> to vector<5xf32>
    %52 = vector.shape_cast %51 : vector<5xf32> to vector<5x1xf32>
    %53 = vector.broadcast %52 : vector<5x1xf32> to vector<5x5xf32>
    %54 = arith.subf %50, %53 : vector<5x5xf32>
    %55 = math.exp %54 : vector<5x5xf32>
    %cst_24 = arith.constant dense<0.000000e+00> : vector<5xf32>
    %56 = vector.multi_reduction <add>, %55, %cst_24 [1] : vector<5x5xf32> to vector<5xf32>
    %57 = vector.shape_cast %56 : vector<5xf32> to vector<5x1xf32>
    %58 = vector.broadcast %57 : vector<5x1xf32> to vector<5x5xf32>
    %59 = arith.divf %55, %58 : vector<5x5xf32>
    %60 = arith.truncf %59 : vector<5x5xf32> to vector<5x5xbf16>
    %cst_25 = arith.constant dense<0.000000e+00> : vector<5x64xf32>
    %61 = tpu.matmul %60, %49, %cst_25 {dimension_numbers = #tpu.dot_dimension_numbers<[1], [0], [0], [1], [0, 0, 1, 1], [], []>} : vector<5x5xbf16>, vector<5x64xbf16>, vector<5x64xf32> -> vector<5x64xf32>
    %62 = arith.truncf %61 : vector<5x64xf32> to vector<5x64xbf16>
    %63 = vector.extract_strided_slice %7 {offsets = [0, 0], sizes = [64, 128], strides = [1, 1]} : vector<128x128xbf16> to vector<64x128xbf16>
    %cst_26 = arith.constant dense<0.000000e+00> : vector<5x128xf32>
    %64 = tpu.matmul %62, %63, %cst_26 {dimension_numbers = #tpu.dot_dimension_numbers<[1], [0], [0], [1], [0, 0, 1, 1], [], []>} : vector<5x64xbf16>, vector<64x128xbf16>, vector<5x128xf32> -> vector<5x128xf32>
    %65 = vector.extract_strided_slice %41 {offsets = [0, 64], sizes = [5, 64], strides = [1, 1]} : vector<5x384xf32> to vector<5x64xf32>
    %cst_27 = arith.constant 1.250000e-01 : f32
    %66 = vector.broadcast %cst_27 : f32 to vector<5x64xf32>
    %67 = arith.mulf %65, %66 : vector<5x64xf32>
    %68 = arith.truncf %67 : vector<5x64xf32> to vector<5x64xbf16>
    %69 = vector.extract_strided_slice %41 {offsets = [0, 192], sizes = [5, 64], strides = [1, 1]} : vector<5x384xf32> to vector<5x64xf32>
    %70 = arith.truncf %69 : vector<5x64xf32> to vector<5x64xbf16>
    %71 = vector.extract_strided_slice %41 {offsets = [0, 320], sizes = [5, 64], strides = [1, 1]} : vector<5x384xf32> to vector<5x64xf32>
    %72 = arith.truncf %71 : vector<5x64xf32> to vector<5x64xbf16>
    %cst_28 = arith.constant dense<0.000000e+00> : vector<5x5xf32>
    %73 = tpu.matmul %68, %70, %cst_28 {dimension_numbers = #tpu.dot_dimension_numbers<[1], [1], [0], [0], [0, 0, 1, 0], [], []>} : vector<5x64xbf16>, vector<5x64xbf16>, vector<5x5xf32> -> vector<5x5xf32>
    %cst_29 = arith.constant dense<0xFF800000> : vector<5xf32>
    %74 = vector.multi_reduction <maximumf>, %73, %cst_29 [1] : vector<5x5xf32> to vector<5xf32>
    %75 = vector.shape_cast %74 : vector<5xf32> to vector<5x1xf32>
    %76 = vector.broadcast %75 : vector<5x1xf32> to vector<5x5xf32>
    %77 = arith.subf %73, %76 : vector<5x5xf32>
    %78 = math.exp %77 : vector<5x5xf32>
    %cst_30 = arith.constant dense<0.000000e+00> : vector<5xf32>
    %79 = vector.multi_reduction <add>, %78, %cst_30 [1] : vector<5x5xf32> to vector<5xf32>
    %80 = vector.shape_cast %79 : vector<5xf32> to vector<5x1xf32>
    %81 = vector.broadcast %80 : vector<5x1xf32> to vector<5x5xf32>
    %82 = arith.divf %78, %81 : vector<5x5xf32>
    %83 = arith.truncf %82 : vector<5x5xf32> to vector<5x5xbf16>
    %cst_31 = arith.constant dense<0.000000e+00> : vector<5x64xf32>
    %84 = tpu.matmul %83, %72, %cst_31 {dimension_numbers = #tpu.dot_dimension_numbers<[1], [0], [0], [1], [0, 0, 1, 1], [], []>} : vector<5x5xbf16>, vector<5x64xbf16>, vector<5x64xf32> -> vector<5x64xf32>
    %85 = arith.truncf %84 : vector<5x64xf32> to vector<5x64xbf16>
    %86 = vector.extract_strided_slice %7 {offsets = [64, 0], sizes = [64, 128], strides = [1, 1]} : vector<128x128xbf16> to vector<64x128xbf16>
    %cst_32 = arith.constant dense<0.000000e+00> : vector<5x128xf32>
    %87 = tpu.matmul %85, %86, %cst_32 {dimension_numbers = #tpu.dot_dimension_numbers<[1], [0], [0], [1], [0, 0, 1, 1], [], []>} : vector<5x64xbf16>, vector<64x128xbf16>, vector<5x128xf32> -> vector<5x128xf32>
    %88 = arith.addf %64, %87 : vector<5x128xf32>
    %89 = vector.extract_strided_slice %40 {offsets = [5, 0], sizes = [5, 384], strides = [1, 1]} : vector<10x384xf32> to vector<5x384xf32>
    %90 = vector.extract_strided_slice %89 {offsets = [0, 0], sizes = [5, 64], strides = [1, 1]} : vector<5x384xf32> to vector<5x64xf32>
    %cst_33 = arith.constant 1.250000e-01 : f32
    %91 = vector.broadcast %cst_33 : f32 to vector<5x64xf32>
    %92 = arith.mulf %90, %91 : vector<5x64xf32>
    %93 = arith.truncf %92 : vector<5x64xf32> to vector<5x64xbf16>
    %94 = vector.extract_strided_slice %89 {offsets = [0, 128], sizes = [5, 64], strides = [1, 1]} : vector<5x384xf32> to vector<5x64xf32>
    %95 = arith.truncf %94 : vector<5x64xf32> to vector<5x64xbf16>
    %96 = vector.extract_strided_slice %89 {offsets = [0, 256], sizes = [5, 64], strides = [1, 1]} : vector<5x384xf32> to vector<5x64xf32>
    %97 = arith.truncf %96 : vector<5x64xf32> to vector<5x64xbf16>
    %cst_34 = arith.constant dense<0.000000e+00> : vector<5x5xf32>
    %98 = tpu.matmul %93, %95, %cst_34 {dimension_numbers = #tpu.dot_dimension_numbers<[1], [1], [0], [0], [0, 0, 1, 0], [], []>} : vector<5x64xbf16>, vector<5x64xbf16>, vector<5x5xf32> -> vector<5x5xf32>
    %cst_35 = arith.constant dense<0xFF800000> : vector<5xf32>
    %99 = vector.multi_reduction <maximumf>, %98, %cst_35 [1] : vector<5x5xf32> to vector<5xf32>
    %100 = vector.shape_cast %99 : vector<5xf32> to vector<5x1xf32>
    %101 = vector.broadcast %100 : vector<5x1xf32> to vector<5x5xf32>
    %102 = arith.subf %98, %101 : vector<5x5xf32>
    %103 = math.exp %102 : vector<5x5xf32>
    %cst_36 = arith.constant dense<0.000000e+00> : vector<5xf32>
    %104 = vector.multi_reduction <add>, %103, %cst_36 [1] : vector<5x5xf32> to vector<5xf32>
    %105 = vector.shape_cast %104 : vector<5xf32> to vector<5x1xf32>
    %106 = vector.broadcast %105 : vector<5x1xf32> to vector<5x5xf32>
    %107 = arith.divf %103, %106 : vector<5x5xf32>
    %108 = arith.truncf %107 : vector<5x5xf32> to vector<5x5xbf16>
    %cst_37 = arith.constant dense<0.000000e+00> : vector<5x64xf32>
    %109 = tpu.matmul %108, %97, %cst_37 {dimension_numbers = #tpu.dot_dimension_numbers<[1], [0], [0], [1], [0, 0, 1, 1], [], []>} : vector<5x5xbf16>, vector<5x64xbf16>, vector<5x64xf32> -> vector<5x64xf32>
    %110 = arith.truncf %109 : vector<5x64xf32> to vector<5x64xbf16>
    %111 = vector.extract_strided_slice %7 {offsets = [0, 0], sizes = [64, 128], strides = [1, 1]} : vector<128x128xbf16> to vector<64x128xbf16>
    %cst_38 = arith.constant dense<0.000000e+00> : vector<5x128xf32>
    %112 = tpu.matmul %110, %111, %cst_38 {dimension_numbers = #tpu.dot_dimension_numbers<[1], [0], [0], [1], [0, 0, 1, 1], [], []>} : vector<5x64xbf16>, vector<64x128xbf16>, vector<5x128xf32> -> vector<5x128xf32>
    %113 = vector.extract_strided_slice %89 {offsets = [0, 64], sizes = [5, 64], strides = [1, 1]} : vector<5x384xf32> to vector<5x64xf32>
    %cst_39 = arith.constant 1.250000e-01 : f32
    %114 = vector.broadcast %cst_39 : f32 to vector<5x64xf32>
    %115 = arith.mulf %113, %114 : vector<5x64xf32>
    %116 = arith.truncf %115 : vector<5x64xf32> to vector<5x64xbf16>
    %117 = vector.extract_strided_slice %89 {offsets = [0, 192], sizes = [5, 64], strides = [1, 1]} : vector<5x384xf32> to vector<5x64xf32>
    %118 = arith.truncf %117 : vector<5x64xf32> to vector<5x64xbf16>
    %119 = vector.extract_strided_slice %89 {offsets = [0, 320], sizes = [5, 64], strides = [1, 1]} : vector<5x384xf32> to vector<5x64xf32>
    %120 = arith.truncf %119 : vector<5x64xf32> to vector<5x64xbf16>
    %cst_40 = arith.constant dense<0.000000e+00> : vector<5x5xf32>
    %121 = tpu.matmul %116, %118, %cst_40 {dimension_numbers = #tpu.dot_dimension_numbers<[1], [1], [0], [0], [0, 0, 1, 0], [], []>} : vector<5x64xbf16>, vector<5x64xbf16>, vector<5x5xf32> -> vector<5x5xf32>
    %cst_41 = arith.constant dense<0xFF800000> : vector<5xf32>
    %122 = vector.multi_reduction <maximumf>, %121, %cst_41 [1] : vector<5x5xf32> to vector<5xf32>
    %123 = vector.shape_cast %122 : vector<5xf32> to vector<5x1xf32>
    %124 = vector.broadcast %123 : vector<5x1xf32> to vector<5x5xf32>
    %125 = arith.subf %121, %124 : vector<5x5xf32>
    %126 = math.exp %125 : vector<5x5xf32>
    %cst_42 = arith.constant dense<0.000000e+00> : vector<5xf32>
    %127 = vector.multi_reduction <add>, %126, %cst_42 [1] : vector<5x5xf32> to vector<5xf32>
    %128 = vector.shape_cast %127 : vector<5xf32> to vector<5x1xf32>
    %129 = vector.broadcast %128 : vector<5x1xf32> to vector<5x5xf32>
    %130 = arith.divf %126, %129 : vector<5x5xf32>
    %131 = arith.truncf %130 : vector<5x5xf32> to vector<5x5xbf16>
    %cst_43 = arith.constant dense<0.000000e+00> : vector<5x64xf32>
    %132 = tpu.matmul %131, %120, %cst_43 {dimension_numbers = #tpu.dot_dimension_numbers<[1], [0], [0], [1], [0, 0, 1, 1], [], []>} : vector<5x5xbf16>, vector<5x64xbf16>, vector<5x64xf32> -> vector<5x64xf32>
    %133 = arith.truncf %132 : vector<5x64xf32> to vector<5x64xbf16>
    %134 = vector.extract_strided_slice %7 {offsets = [64, 0], sizes = [64, 128], strides = [1, 1]} : vector<128x128xbf16> to vector<64x128xbf16>
    %cst_44 = arith.constant dense<0.000000e+00> : vector<5x128xf32>
    %135 = tpu.matmul %133, %134, %cst_44 {dimension_numbers = #tpu.dot_dimension_numbers<[1], [0], [0], [1], [0, 0, 1, 1], [], []>} : vector<5x64xbf16>, vector<64x128xbf16>, vector<5x128xf32> -> vector<5x128xf32>
    %136 = arith.addf %112, %135 : vector<5x128xf32>
    %137 = tpu.concatenate %88, %136 in 0 : vector<5x128xf32>, vector<5x128xf32> -> vector<10x128xf32>
    %138 = arith.addf %8, %137 : vector<10x128xf32>
    %139 = vector.extract_strided_slice %5 {offsets = [2, 0], sizes = [1, 128], strides = [1, 1]} : vector<8x128xf32> to vector<1x128xf32>
    %140 = vector.broadcast %139 : vector<1x128xf32> to vector<10x128xf32>
    %141 = arith.addf %138, %140 : vector<10x128xf32>
    %142 = vector.extract_strided_slice %5 {offsets = [3, 0], sizes = [1, 128], strides = [1, 1]} : vector<8x128xf32> to vector<1x128xf32>
    %143 = vector.extract_strided_slice %5 {offsets = [4, 0], sizes = [1, 128], strides = [1, 1]} : vector<8x128xf32> to vector<1x128xf32>
    %cst_45 = arith.constant dense<0.000000e+00> : vector<10xf32>
    %144 = vector.multi_reduction <add>, %141, %cst_45 [1] : vector<10x128xf32> to vector<10xf32>
    %145 = vector.shape_cast %144 : vector<10xf32> to vector<10x1xf32>
    %cst_46 = arith.constant 1.280000e+02 : f32
    %146 = vector.broadcast %cst_46 : f32 to vector<10x1xf32>
    %147 = arith.divf %145, %146 : vector<10x1xf32>
    %148 = vector.broadcast %147 : vector<10x1xf32> to vector<10x128xf32>
    %149 = arith.subf %141, %148 : vector<10x128xf32>
    %150 = arith.mulf %149, %149 : vector<10x128xf32>
    %cst_47 = arith.constant dense<0.000000e+00> : vector<10xf32>
    %151 = vector.multi_reduction <add>, %150, %cst_47 [1] : vector<10x128xf32> to vector<10xf32>
    %152 = vector.shape_cast %151 : vector<10xf32> to vector<10x1xf32>
    %cst_48 = arith.constant 1.280000e+02 : f32
    %153 = vector.broadcast %cst_48 : f32 to vector<10x1xf32>
    %154 = arith.divf %152, %153 : vector<10x1xf32>
    %155 = vector.broadcast %147 : vector<10x1xf32> to vector<10x128xf32>
    %156 = arith.subf %141, %155 : vector<10x128xf32>
    %cst_49 = arith.constant 9.99999974E-6 : f32
    %157 = vector.broadcast %cst_49 : f32 to vector<10x1xf32>
    %158 = arith.addf %154, %157 : vector<10x1xf32>
    %159 = math.rsqrt %158 : vector<10x1xf32>
    %160 = vector.broadcast %159 : vector<10x1xf32> to vector<10x128xf32>
    %161 = arith.mulf %156, %160 : vector<10x128xf32>
    %162 = vector.broadcast %142 : vector<1x128xf32> to vector<10x128xf32>
    %163 = arith.mulf %161, %162 : vector<10x128xf32>
    %164 = vector.broadcast %143 : vector<1x128xf32> to vector<10x128xf32>
    %165 = arith.addf %163, %164 : vector<10x128xf32>
    %166 = arith.truncf %165 : vector<10x128xf32> to vector<10x128xbf16>
    %c0_50 = arith.constant 0 : index
    %c0_51 = arith.constant 0 : index
    %c0_52 = arith.constant 0 : index
    %167 = vector.load %arg10[%c0_50, %c0_51, %c0_52] : memref<1x128x256xbf16, #tpu.memory_space<vmem>>, vector<1x128x256xbf16>
    %168 = vector.shape_cast %167 : vector<1x128x256xbf16> to vector<128x256xbf16>
    %cst_53 = arith.constant dense<0.000000e+00> : vector<10x256xf32>
    %169 = tpu.matmul %166, %168, %cst_53 {dimension_numbers = #tpu.dot_dimension_numbers<[1], [0], [0], [1], [0, 0, 1, 1], [], []>} : vector<10x128xbf16>, vector<128x256xbf16>, vector<10x256xf32> -> vector<10x256xf32>
    %c0_54 = arith.constant 0 : index
    %c0_55 = arith.constant 0 : index
    %c0_56 = arith.constant 0 : index
    %170 = vector.load %arg11[%c0_54, %c0_55, %c0_56] : memref<1x1x256xf32, #tpu.memory_space<vmem>>, vector<1x1x256xf32>
    %171 = vector.shape_cast %170 : vector<1x1x256xf32> to vector<1x256xf32>
    %172 = vector.broadcast %171 : vector<1x256xf32> to vector<10x256xf32>
    %173 = arith.addf %169, %172 : vector<10x256xf32>
    %cst_57 = arith.constant 1.702000e+00 : f32
    %174 = vector.broadcast %cst_57 : f32 to vector<10x256xf32>
    %175 = arith.mulf %174, %173 : vector<10x256xf32>
    %176 = arith.negf %175 : vector<10x256xf32>
    %177 = math.exp %176 : vector<10x256xf32>
    %cst_58 = arith.constant 1.000000e+00 : f32
    %178 = vector.broadcast %cst_58 : f32 to vector<10x256xf32>
    %179 = arith.addf %178, %177 : vector<10x256xf32>
    %180 = arith.divf %178, %179 : vector<10x256xf32>
    %181 = arith.mulf %173, %180 : vector<10x256xf32>
    %182 = arith.truncf %181 : vector<10x256xf32> to vector<10x256xbf16>
    %c0_59 = arith.constant 0 : index
    %c0_60 = arith.constant 0 : index
    %c0_61 = arith.constant 0 : index
    %183 = vector.load %arg12[%c0_59, %c0_60, %c0_61] : memref<1x256x128xbf16, #tpu.memory_space<vmem>>, vector<1x256x128xbf16>
    %184 = vector.shape_cast %183 : vector<1x256x128xbf16> to vector<256x128xbf16>
    %cst_62 = arith.constant dense<0.000000e+00> : vector<10x128xf32>
    %185 = tpu.matmul %182, %184, %cst_62 {dimension_numbers = #tpu.dot_dimension_numbers<[1], [0], [0], [1], [0, 0, 1, 1], [], []>} : vector<10x256xbf16>, vector<256x128xbf16>, vector<10x128xf32> -> vector<10x128xf32>
    %186 = arith.addf %141, %185 : vector<10x128xf32>
    %187 = vector.extract_strided_slice %5 {offsets = [5, 0], sizes = [1, 128], strides = [1, 1]} : vector<8x128xf32> to vector<1x128xf32>
    %188 = vector.broadcast %187 : vector<1x128xf32> to vector<10x128xf32>
    %189 = arith.addf %186, %188 : vector<10x128xf32>
    %c0_63 = arith.constant 0 : index
    %c0_64 = arith.constant 0 : index
    %190 = vector.load %arg17[%c0_63, %c0_64] : memref<10x128xf32, #tpu.memory_space<vmem>>, vector<10x128xf32>
    tpu.vector_store %arg17[%c0_63, %c0_64], %189 {strides = array<i32>} : memref<10x128xf32, #tpu.memory_space<vmem>>, vector<10x128xf32>,
    %c1_i32 = arith.constant 1 : i32
    %191 = arith.cmpi eq, %arg1, %c1_i32 : i32
    %192 = arith.extui %191 : i1 to i32
    %c0_i32_65 = arith.constant 0 : i32
    %193 = arith.cmpi ne, %192, %c0_i32_65 : i32
    scf.if %193 {
      %194 = vector.extract_strided_slice %189 {offsets = [0, 0], sizes = [5, 128], strides = [1, 1]} : vector<10x128xf32> to vector<5x128xf32>
      %c0_66 = arith.constant 0 : index
      %c0_67 = arith.constant 0 : index
      %c0_68 = arith.constant 0 : index
      %195 = vector.load %arg15[%c0_66, %c0_67, %c0_68] : memref<2x5x128xf32, #tpu.memory_space<vmem>>, vector<1x5x128xf32>
      %196 = vector.shape_cast %195 : vector<1x5x128xf32> to vector<5x128xf32>
      %197 = vector.shape_cast %194 : vector<5x128xf32> to vector<1x5x128xf32>
      tpu.vector_store %arg15[%c0_66, %c0_67, %c0_68], %197 {strides = array<i32>} : memref<2x5x128xf32, #tpu.memory_space<vmem>>, vector<1x5x128xf32>,
      %198 = vector.extract_strided_slice %189 {offsets = [5, 0], sizes = [5, 128], strides = [1, 1]} : vector<10x128xf32> to vector<5x128xf32>
      %c1 = arith.constant 1 : index
      %c0_69 = arith.constant 0 : index
      %c0_70 = arith.constant 0 : index
      %199 = vector.load %arg15[%c1, %c0_69, %c0_70] : memref<2x5x128xf32, #tpu.memory_space<vmem>>, vector<1x5x128xf32>
      %200 = vector.shape_cast %199 : vector<1x5x128xf32> to vector<5x128xf32>
      %201 = vector.shape_cast %198 : vector<5x128xf32> to vector<1x5x128xf32>
      tpu.vector_store %arg15[%c1, %c0_69, %c0_70], %201 {strides = array<i32>} : memref<2x5x128xf32, #tpu.memory_space<vmem>>, vector<1x5x128xf32>,
      %202 = vector.extract_strided_slice %189 {offsets = [0, 0], sizes = [1, 128], strides = [1, 1]} : vector<10x128xf32> to vector<1x128xf32>
      %203 = vector.extract_strided_slice %189 {offsets = [5, 0], sizes = [1, 128], strides = [1, 1]} : vector<10x128xf32> to vector<1x128xf32>
      %204 = tpu.concatenate %202, %203 in 0 : vector<1x128xf32>, vector<1x128xf32> -> vector<2x128xf32>
      %205 = vector.extract_strided_slice %0 {offsets = [2, 0], sizes = [1, 128], strides = [1, 1]} : vector<8x128xf32> to vector<1x128xf32>
      %206 = vector.extract_strided_slice %0 {offsets = [3, 0], sizes = [1, 128], strides = [1, 1]} : vector<8x128xf32> to vector<1x128xf32>
      %cst_71 = arith.constant dense<0.000000e+00> : vector<2xf32>
      %207 = vector.multi_reduction <add>, %204, %cst_71 [1] : vector<2x128xf32> to vector<2xf32>
      %208 = vector.shape_cast %207 : vector<2xf32> to vector<2x1xf32>
      %cst_72 = arith.constant 1.280000e+02 : f32
      %209 = vector.broadcast %cst_72 : f32 to vector<2x1xf32>
      %210 = arith.divf %208, %209 : vector<2x1xf32>
      %211 = vector.broadcast %210 : vector<2x1xf32> to vector<2x128xf32>
      %212 = arith.subf %204, %211 : vector<2x128xf32>
      %213 = arith.mulf %212, %212 : vector<2x128xf32>
      %cst_73 = arith.constant dense<0.000000e+00> : vector<2xf32>
      %214 = vector.multi_reduction <add>, %213, %cst_73 [1] : vector<2x128xf32> to vector<2xf32>
      %215 = vector.shape_cast %214 : vector<2xf32> to vector<2x1xf32>
      %cst_74 = arith.constant 1.280000e+02 : f32
      %216 = vector.broadcast %cst_74 : f32 to vector<2x1xf32>
      %217 = arith.divf %215, %216 : vector<2x1xf32>
      %218 = vector.broadcast %210 : vector<2x1xf32> to vector<2x128xf32>
      %219 = arith.subf %204, %218 : vector<2x128xf32>
      %cst_75 = arith.constant 9.99999974E-6 : f32
      %220 = vector.broadcast %cst_75 : f32 to vector<2x1xf32>
      %221 = arith.addf %217, %220 : vector<2x1xf32>
      %222 = math.rsqrt %221 : vector<2x1xf32>
      %223 = vector.broadcast %222 : vector<2x1xf32> to vector<2x128xf32>
      %224 = arith.mulf %219, %223 : vector<2x128xf32>
      %225 = vector.broadcast %205 : vector<1x128xf32> to vector<2x128xf32>
      %226 = arith.mulf %224, %225 : vector<2x128xf32>
      %227 = vector.broadcast %206 : vector<1x128xf32> to vector<2x128xf32>
      %228 = arith.addf %226, %227 : vector<2x128xf32>
      %229 = arith.truncf %228 : vector<2x128xf32> to vector<2x128xbf16>
      %c0_76 = arith.constant 0 : index
      %c0_77 = arith.constant 0 : index
      %230 = vector.load %arg13[%c0_76, %c0_77] : memref<128x32xbf16, #tpu.memory_space<vmem>>, vector<128x32xbf16>
      %cst_78 = arith.constant dense<0.000000e+00> : vector<2x32xf32>
      %231 = tpu.matmul %229, %230, %cst_78 {dimension_numbers = #tpu.dot_dimension_numbers<[1], [0], [0], [1], [0, 0, 1, 1], [], []>} : vector<2x128xbf16>, vector<128x32xbf16>, vector<2x32xf32> -> vector<2x32xf32>
      %232 = vector.extract_strided_slice %0 {offsets = [5, 0], sizes = [1, 32], strides = [1, 1]} : vector<8x128xf32> to vector<1x32xf32>
      %233 = vector.broadcast %232 : vector<1x32xf32> to vector<2x32xf32>
      %234 = arith.addf %231, %233 : vector<2x32xf32>
      %cst_79 = arith.constant 0.000000e+00 : f32
      %235 = vector.broadcast %cst_79 : f32 to vector<2x32xf32>
      %236 = arith.maximumf %234, %235 : vector<2x32xf32>
      %237 = arith.truncf %236 : vector<2x32xf32> to vector<2x32xbf16>
      %c0_80 = arith.constant 0 : index
      %c0_81 = arith.constant 0 : index
      %238 = vector.load %arg14[%c0_80, %c0_81] : memref<32x128xbf16, #tpu.memory_space<vmem>>, vector<32x128xbf16>
      %cst_82 = arith.constant dense<0.000000e+00> : vector<2x128xf32>
      %239 = tpu.matmul %237, %238, %cst_82 {dimension_numbers = #tpu.dot_dimension_numbers<[1], [0], [0], [1], [0, 0, 1, 1], [], []>} : vector<2x32xbf16>, vector<32x128xbf16>, vector<2x128xf32> -> vector<2x128xf32>
      %240 = vector.extract_strided_slice %0 {offsets = [4, 0], sizes = [1, 128], strides = [1, 1]} : vector<8x128xf32> to vector<1x128xf32>
      %241 = vector.broadcast %240 : vector<1x128xf32> to vector<2x128xf32>
      %242 = arith.addf %239, %241 : vector<2x128xf32>
      %cst_83 = arith.constant 0.000000e+00 : f32
      %243 = vector.broadcast %cst_83 : f32 to vector<2x128xf32>
      %244 = arith.maximumf %242, %243 : vector<2x128xf32>
      %cst_84 = arith.constant 2.000000e-01 : f32
      %245 = vector.broadcast %cst_84 : f32 to vector<2x128xf32>
      %246 = arith.mulf %245, %244 : vector<2x128xf32>
      %cst_85 = arith.constant 8.000000e-01 : f32
      %247 = vector.broadcast %cst_85 : f32 to vector<2x128xf32>
      %248 = arith.mulf %247, %228 : vector<2x128xf32>
      %249 = arith.addf %246, %248 : vector<2x128xf32>
      %250 = vector.extract_strided_slice %249 {offsets = [0, 0], sizes = [1, 128], strides = [1, 1]} : vector<2x128xf32> to vector<1x128xf32>
      %c0_86 = arith.constant 0 : index
      %c0_87 = arith.constant 0 : index
      %c0_88 = arith.constant 0 : index
      %251 = vector.load %arg16[%c0_86, %c0_87, %c0_88] : memref<2x1x128xf32, #tpu.memory_space<vmem>>, vector<1x1x128xf32>
      %252 = vector.shape_cast %251 : vector<1x1x128xf32> to vector<1x128xf32>
      %253 = vector.shape_cast %250 : vector<1x128xf32> to vector<1x1x128xf32>
      tpu.vector_store %arg16[%c0_86, %c0_87, %c0_88], %253 {strides = array<i32>} : memref<2x1x128xf32, #tpu.memory_space<vmem>>, vector<1x1x128xf32>,
      %254 = vector.extract_strided_slice %249 {offsets = [1, 0], sizes = [1, 128], strides = [1, 1]} : vector<2x128xf32> to vector<1x128xf32>
      %c1_89 = arith.constant 1 : index
      %c0_90 = arith.constant 0 : index
      %c0_91 = arith.constant 0 : index
      %255 = vector.load %arg16[%c1_89, %c0_90, %c0_91] : memref<2x1x128xf32, #tpu.memory_space<vmem>>, vector<1x1x128xf32>
      %256 = vector.shape_cast %255 : vector<1x1x128xf32> to vector<1x128xf32>
      %257 = vector.shape_cast %254 : vector<1x128xf32> to vector<1x1x128xf32>
      tpu.vector_store %arg16[%c1_89, %c0_90, %c0_91], %257 {strides = array<i32>} : memref<2x1x128xf32, #tpu.memory_space<vmem>>, vector<1x1x128xf32>,
    } else {
    }
    return
  }
  func.func @transform_0(%arg0: i32, %arg1: i32) -> (i32, i32) {
    %c0_i32 = arith.constant 0 : i32
    %c0_i32_0 = arith.constant 0 : i32
    return %arg0, %c0_i32 : i32, i32
  }
  func.func @transform_1(%arg0: i32, %arg1: i32) -> (i32, i32) {
    %c0_i32 = arith.constant 0 : i32
    %c0_i32_0 = arith.constant 0 : i32
    %c0_i32_1 = arith.constant 0 : i32
    return %c0_i32, %c0_i32_0 : i32, i32
  }
  func.func @transform_2(%arg0: i32, %arg1: i32) -> (i32, i32) {
    %c0_i32 = arith.constant 0 : i32
    %c0_i32_0 = arith.constant 0 : i32
    %c0_i32_1 = arith.constant 0 : i32
    return %c0_i32, %c0_i32_0 : i32, i32
  }
  func.func @transform_3(%arg0: i32, %arg1: i32) -> (i32, i32) {
    %c0_i32 = arith.constant 0 : i32
    %c0_i32_0 = arith.constant 0 : i32
    %c0_i32_1 = arith.constant 0 : i32
    return %c0_i32, %c0_i32_0 : i32, i32
  }
  func.func @transform_4(%arg0: i32, %arg1: i32) -> (i32, i32, i32) {
    %c0_i32 = arith.constant 0 : i32
    %c0_i32_0 = arith.constant 0 : i32
    %c0_i32_1 = arith.constant 0 : i32
    return %arg1, %c0_i32, %c0_i32_0 : i32, i32, i32
  }
  func.func @transform_5(%arg0: i32, %arg1: i32) -> (i32, i32, i32) {
    %c0_i32 = arith.constant 0 : i32
    %c0_i32_0 = arith.constant 0 : i32
    %c0_i32_1 = arith.constant 0 : i32
    return %arg1, %c0_i32, %c0_i32_0 : i32, i32, i32
  }
  func.func @transform_6(%arg0: i32, %arg1: i32) -> (i32, i32, i32) {
    %c0_i32 = arith.constant 0 : i32
    %c0_i32_0 = arith.constant 0 : i32
    %c0_i32_1 = arith.constant 0 : i32
    return %arg1, %c0_i32, %c0_i32_0 : i32, i32, i32
  }
  func.func @transform_7(%arg0: i32, %arg1: i32) -> (i32, i32, i32) {
    %c0_i32 = arith.constant 0 : i32
    %c0_i32_0 = arith.constant 0 : i32
    %c0_i32_1 = arith.constant 0 : i32
    return %arg1, %c0_i32, %c0_i32_0 : i32, i32, i32
  }
  func.func @transform_8(%arg0: i32, %arg1: i32) -> (i32, i32, i32) {
    %c0_i32 = arith.constant 0 : i32
    %c0_i32_0 = arith.constant 0 : i32
    %c0_i32_1 = arith.constant 0 : i32
    return %arg1, %c0_i32, %c0_i32_0 : i32, i32, i32
  }
  func.func @transform_9(%arg0: i32, %arg1: i32) -> (i32, i32, i32) {
    %c0_i32 = arith.constant 0 : i32
    %c0_i32_0 = arith.constant 0 : i32
    %c0_i32_1 = arith.constant 0 : i32
    return %arg1, %c0_i32, %c0_i32_0 : i32, i32, i32
  }
  func.func @transform_10(%arg0: i32, %arg1: i32) -> (i32, i32, i32) {
    %c0_i32 = arith.constant 0 : i32
    %c0_i32_0 = arith.constant 0 : i32
    %c0_i32_1 = arith.constant 0 : i32
    return %arg1, %c0_i32, %c0_i32_0 : i32, i32, i32
  }
  func.func @transform_11(%arg0: i32, %arg1: i32) -> (i32, i32) {
    %c0_i32 = arith.constant 0 : i32
    %c0_i32_0 = arith.constant 0 : i32
    %c0_i32_1 = arith.constant 0 : i32
    return %c0_i32, %c0_i32_0 : i32, i32
  }
  func.func @transform_12(%arg0: i32, %arg1: i32) -> (i32, i32) {
    %c0_i32 = arith.constant 0 : i32
    %c0_i32_0 = arith.constant 0 : i32
    %c0_i32_1 = arith.constant 0 : i32
    return %c0_i32, %c0_i32_0 : i32, i32
  }
  func.func @transform_13(%arg0: i32, %arg1: i32) -> (i32, i32, i32) {
    %c0_i32 = arith.constant 0 : i32
    %c0_i32_0 = arith.constant 0 : i32
    %c0_i32_1 = arith.constant 0 : i32
    return %arg0, %c0_i32, %c0_i32_0 : i32, i32, i32
  }
  func.func @transform_14(%arg0: i32, %arg1: i32) -> (i32, i32, i32) {
    %c0_i32 = arith.constant 0 : i32
    %c0_i32_0 = arith.constant 0 : i32
    %c0_i32_1 = arith.constant 0 : i32
    return %arg0, %c0_i32, %c0_i32_0 : i32, i32, i32
  }
}

</mosaic_0001>

<bundles_post_ra>
// kernel: tpu_custom_call.1
= control target key start
LH: loop header
LB: loop body
LE: loop exit
PB: predicated region body
PF: predicated region fallthrough
CT: control target
= control target key end

     0   :  { %s4664_s0 = inlined_call_operand.vmem [shape: f32[16,192], index: 0, kind: input, shape index: {}]   ;;  %s4665_s1 = inlined_call_operand.hbm [shape: bf16[192,128], index: 1, kind: input, shape index: {}]   ;;  %s4666_s2 = inlined_call_operand.vmem [shape: f32[5,128], index: 2, kind: input, shape index: {}]   ;;  %s4667_s3 = inlined_call_operand.vmem [shape: f32[8,128], index: 3, kind: input, shape index: {}]   ;;  %s4668_s4 = inlined_call_operand.vmem [shape: f32[2,8,128], index: 4, kind: input, shape index: {}]   ;;  %s4669_s5 = inlined_call_operand.hbm [shape: bf16[2,128,384], index: 5, kind: input, shape index: {}]   ;;  %s4670_s6 = inlined_call_operand.vmem [shape: f32[2,1,384], index: 6, kind: input, shape index: {}]   ;;  %s4671_s7 = inlined_call_operand.hbm [shape: bf16[2,128,128], index: 7, kind: input, shape index: {}]   ;;  %s4672_s8 = inlined_call_operand.hbm [shape: bf16[2,128,256], index: 8, kind: input, shape index: {}]   ;;  %s4673_s9 = inlined_call_operand.vmem [shape: f32[2,1,256], index: 9, kind: input, shape index: {}]   ;;  %s4674_s10 = inlined_call_operand.hbm [shape: bf16[2,256,128], index: 10, kind: input, shape index: {}]   ;;  %s4675_s11 = inlined_call_operand.vmem [shape: bf16[128,32], index: 11, kind: input, shape index: {}]   ;;  %s4676_s12 = inlined_call_operand.vmem [shape: bf16[32,128], index: 12, kind: input, shape index: {}]   ;;  %s4677_s13 = inlined_call_operand.vmem [shape: f32[4,5,128], index: 13, kind: output, shape index: {0}]   ;;  %s4678_s14 = inlined_call_operand.hbm [shape: f32[4,1,128], index: 14, kind: output, shape index: {1}]  }
   0x1   :  { %4702 = sst [smem:[#allocation29_spill]] %s4664_s0 }
   0x2   :  { %4703 = sst [smem:[#allocation30_spill]] %s4665_s1 }
   0x3   :  { %4704 = sst [smem:[#allocation31_spill]] %s4666_s2 }
   0x4   :  { %4705 = sst [smem:[#allocation32_spill]] %s4667_s3 }
   0x5   :  { %4706 = sst [smem:[#allocation33_spill]] %s4668_s4 }
   0x6   :  { %4707 = sst [smem:[#allocation34_spill]] %s4669_s5 }
   0x7   :  { %4708 = sst [smem:[#allocation35_spill]] %s4670_s6 }
   0x8   :  { %4709 = sst [smem:[#allocation36_spill]] %s4671_s7 }
   0x9   :  { %4710 = sst [smem:[#allocation37_spill]] %s4672_s8 }
   0xa   :  { %4711 = sst [smem:[#allocation38_spill]] %s4673_s9 }
   0xb   :  { %4712 = sst [smem:[#allocation39_spill]] %s4674_s10 }
   0xc   :  { %4713 = sst [smem:[#allocation40_spill]] %s4675_s11 }
   0xd   :  { %4714 = sst [smem:[#allocation41_spill]] %s4676_s12 }
   0xe   :  { %4715 = sst [smem:[#allocation42_spill]] %s4677_s13 }
   0xf   :  { %4716 = sst [smem:[#allocation43_spill]] %s4678_s14 }
  0x10   :  { %20 = vsyncpa [#allocation4], 0 }
  0x11   :  { %21 = vsyncpa [#allocation7], 0 }
  0x12   :  { %23 = vsyncpa [#allocation7 + $0x1], 0 }
  0x13   :  { %24 = vsyncpa [#allocation10], 0 }
  0x14   :  { %26 = vsyncpa [#allocation10 + $0x1], 0 }
  0x15   :  { %27 = vsyncpa [#allocation5], 0 }
  0x16   :  { %29 = vsyncpa [#allocation5 + $0x1], 0  ;;  %s3883_s29 = smov 0   ;;  %s3885_s30 = smov 0  }
  0x17   :  { %s3887_s15 = smov 0   ;;  %s3889_s16 = smov 0  }
  0x18   :  { %s3891_s17 = smov 0   ;;  %s3893_s18 = smov 0  }
  0x19   :  { %s3895_s19 = smov 0   ;;  %s3897_s20 = smov 0  }
  0x1a   :  { %s3899_s21 = smov 0   ;;  %s3901_s22 = smov 0  }
  0x1b   :  { %s3903_s23 = smov 0  }
  0x1c LB: > { %4717 = sst [smem:[#allocation17_spill]] %s3744_s29  ;;  %s44_s24 = sadd.s32 1, %s3776_s21  ;;  %s3784_s23 = sphi %s3903_s23, %s35_s23   ;;  %s3780_s22 = sphi %s3901_s22, %s4777_s22   ;;  %s3776_s21 = sphi %s3899_s21, %s4776_s21   ;;  %s3772_s20 = sphi %s3897_s20, %s4775_s20   ;;  %s3768_s19 = sphi %s3895_s19, %s4774_s19   ;;  %s3764_s18 = sphi %s3893_s18, %s4773_s18   ;;  %s3760_s17 = sphi %s3891_s17, %s4772_s17   ;;  %s3756_s16 = sphi %s3889_s16, %s4771_s16   ;;  %s3752_s15 = sphi %s3887_s15, %s4770_s15   ;;  %s3748_s30 = sphi %s3885_s30, %s4779_s30   ;;  %s3744_s29 = sphi %s3883_s29, %s4778_s29  }
  0x1d   : > { %4718 = sst [smem:[#allocation18_spill]] %s3752_s15  ;;  %s47_s25 = sadd.s32 1, %s3780_s22 }
  0x1e   : > { %4719 = sst [smem:[#allocation19_spill]] %s3760_s17  ;;  %p45_p0 = scmp.ge.s32.totalorder %s44_s24, 2 }
  0x1f   : > { %4720 = sst [smem:[#allocation20_spill]] %s3764_s18  ;;  %s169_s26 = sadd.s32 1, %s3764_s18 }
  0x20   : > { %4721 = sst [smem:[#allocation21_spill]] %s3768_s19  ;;  %p176_p1 = scmp.ne.s32.totalorder %s3764_s18, %s3760_s17 }
  0x21   : > { %4722 = sst [smem:[#allocation22_spill]] %s3776_s21  ;;  %p177_p2 = scmp.eq.s32.totalorder %s3784_s23, 0 }
  0x22   : > { %4723 = sst [smem:[#allocation23_spill]] %s3780_s22  ;;  %s4781_s24 = smov (%p45_p0, %s44_s24), 0 }
  0x23   : > { %4724 = sst [smem:[#allocation24_spill]] %s4781_s24  ;;  %s4783_s25 = smov (!%p45_p0, %s47_s25), %s3780_s22 }
  0x24   : > { %s166_s27 = ssub.s32 %s3776_s21, %s4781_s24  ;;  %p178_p3 = por %p177_p2, %p176_p1 }
  0x25   : > { %p49_p4 = scmp.ge.s32.totalorder %s4783_s25, 2  ;;  %p167_p5 = scmp.eq.s32.totalorder %s166_s27, 0 }
  0x26   : > { %p3248_p6 = scmp.lt.s32.totalorder %s3784_s23, 4  ;;  %s3957_s12 = sand.u32 1, %s3764_s18  }
  0x27   : > { %s4785_s25 = smov (%p49_p4, %s4783_s25), 0  ;;  %s3208_s11 = smul.u32 192, %s3957_s12 }
  0x28   : > { %4725 = sst [smem:[#allocation25_spill]] %s4785_s25  ;;  %s3209_s2 = smul.u32 3072, %s3776_s21 }
  0x29   : > { %s3953_s28 = scalar_select %p167_p5, %s3764_s18, %s169_s26  }
  0x2a   : > { %p3961_p7 = pnand %p3248_p6, %p178_p3  ;;  %s4728_s5 = sld [smem:[#allocation34_spill]] }
  0x2b   : > { %4726 = sst [smem:[#allocation26_spill]] %s3953_s28  ;;  %s474_s26 = scalar_lea.vmem [#allocation6], %s3208_s11 }
  0x2c   : > { %s4727_s13 = scalar_select %p3961_p7, 1, 0 }
  0x2d   : > { %s481_s14 = sshll.u32 %s474_s26, 4  ;;  %s4729_s28 = sand.u32 1, %s3784_s23   ;;  %s3970_s14 = int_to_ptr.vmem [resolvable:$true] %s481_s14 }
  0x2e   : > { %s3974_s18 = scalar_lea.sflag [#allocation7], %s4729_s28  ;;  %p3980_p9 = pneg %p3961_p7 }
  0x30   : > { %s3968_s27 = scalar_lea.hbm %s4728_s5, %s3209_s2  ;;  %s3511_s11 = scalar_lea.hbm %s4728_s5, 6144 }
  0x31   : > { %s3506_s6 = scalar_lea.hbm %s3968_s27, 3072  ;;  %p3512_p12 = scmp.lt.u32.totalorder %s3968_s27, %s4728_s5 }
  0x32   : > { %p3507_p8 = scmp.ne.s32.totalorder %s3968_s27, %s3506_s6  ;;  %p3513_p13 = scmp.lt.u32.totalorder %s3511_s11, %s3506_s6 }
  0x33   : > { %s4730_s4 = scalar_select %p3980_p9, 1, 0 }
  0x34   : > { %p3509_p10 = pnand %p3980_p9, %p3507_p8  ;;  %p3514_p0 = por %p3513_p13, %p3512_p12 }
  0x35   : > { %p3515_p1 = scmp.lt.u32.totalorder %s3506_s6, %s3968_s27 }
  0x36   : > { %p3510_p11 = pneg %p3509_p10 }
  0x37   : > { %p3516_p2 = por %p3515_p1, %p3514_p0 }
  0x39   : > { %p3517_p3 = pnand %p3516_p2, %p3510_p11 }
  0x3b   : > { %3520 = shalt.err (!%p3517_p3)
}
  0x3c   : > { %s3521_s28 = scalar_lea.vmem %s3970_s14, 3072  ;;  %s3786_s2 = smov [#allocation6]  }
  0x3d   : > { %p3522_p4 = scmp.ne.s32.totalorder %s3970_s14, %s3521_s28  ;;  %s3526_s9 = sshll.u32 %s3786_s2, 4  ;;  %s3527_s9 = int_to_ptr.vmem [resolvable:$false] %s3526_s9 }
  0x3e   : > { %s3528_s24 = scalar_lea.vmem %s3527_s9, 6144  ;;  %p3529_p8 = scmp.lt.s32.totalorder %s3970_s14, %s3527_s9 }
  0x3f   : > { %p3524_p5 = pnand %p3522_p4, %p3980_p9  ;;  %p3530_p10 = scmp.lt.s32.totalorder %s3528_s24, %s3521_s28 }
  0x41   : > { %p3525_p6 = pneg %p3524_p5  ;;  %p3531_p12 = por %p3530_p10, %p3529_p8 }
  0x43   : > { %p3532_p13 = pnand %p3531_p12, %p3525_p6 }
  0x45   : > { %3535 = shalt.err (!%p3532_p13)
}
  0x46   : > { %s3787_s6 = smov 192   ;;  %s3788_s11 = smov 12  }
  0x47   : > { %3233 = dma.hbm_to_vmem [thread:$0]  (!%p3961_p7), %s3968_s27, 3072, %s3970_s14, %s3974_s18, %s3787_s6, %s3787_s6, %s3788_s11  }
  0x48   : > { %s2843_s26 = sshll.u32 %s3957_s12, 7  ;;  %s2976_s2 = sshll.u32 %s3776_s21, 11 }
  0x49   : > { %s4731_s8 = sld [smem:[#allocation37_spill]]  ;;  %s523_s5 = scalar_lea.vmem [#allocation9], %s2843_s26 }
  0x4a   : > { %s530_s3 = sshll.u32 %s523_s5, 4  ;;  %s4732_s0 = sand.u32 1, %s3784_s23   ;;  %s4015_s3 = int_to_ptr.vmem [resolvable:$true] %s530_s3 }
  0x4b   : > { %s4019_s19 = scalar_lea.sflag [#allocation10], %s4732_s0 }
  0x4f   : > { %s4011_s24 = scalar_lea.hbm %s4731_s8, %s2976_s2  ;;  %s3541_s11 = scalar_lea.hbm %s4731_s8, 4096 }
  0x50   : > { %s3536_s14 = scalar_lea.hbm %s4011_s24, 2048  ;;  %p3542_p2 = scmp.lt.u32.totalorder %s4011_s24, %s4731_s8 }
  0x51   : > { %p3537_p11 = scmp.ne.s32.totalorder %s4011_s24, %s3536_s14  ;;  %p3543_p3 = scmp.lt.u32.totalorder %s3541_s11, %s3536_s14 }
  0x52   : > { %p3545_p5 = scmp.lt.u32.totalorder %s3536_s14, %s4011_s24 }
  0x53   : > { %p3539_p0 = pnand %p3537_p11, %p3980_p9  ;;  %p3544_p4 = por %p3543_p3, %p3542_p2 }
  0x55   : > { %p3540_p1 = pneg %p3539_p0  ;;  %p3546_p6 = por %p3545_p5, %p3544_p4 }
  0x57   : > { %p3547_p8 = pnand %p3546_p6, %p3540_p1 }
  0x59   : > { %3550 = shalt.err (!%p3547_p8)
}
  0x5a   : > { %s3551_s0 = scalar_lea.vmem %s4015_s3, 2048  ;;  %s3789_s5 = smov [#allocation9]  }
  0x5b   : > { %p3552_p10 = scmp.ne.s32.totalorder %s4015_s3, %s3551_s0  ;;  %s3556_s27 = sshll.u32 %s3789_s5, 4  ;;  %s3557_s27 = int_to_ptr.vmem [resolvable:$false] %s3556_s27 }
  0x5c   : > { %s3558_s6 = scalar_lea.vmem %s3557_s27, 4096  ;;  %p3559_p11 = scmp.lt.s32.totalorder %s4015_s3, %s3557_s27 }
  0x5d   : > { %p3554_p12 = pnand %p3552_p10, %p3980_p9  ;;  %p3560_p0 = scmp.lt.s32.totalorder %s3558_s6, %s3551_s0 }
  0x5f   : > { %p3555_p13 = pneg %p3554_p12  ;;  %p3561_p2 = por %p3560_p0, %p3559_p11 }
  0x61   : > { %p3562_p3 = pnand %p3561_p2, %p3555_p13 }
  0x63   : > { %3565 = shalt.err (!%p3562_p3)
}
  0x64   : > { %s3790_s14 = smov 128   ;;  %s3791_s11 = smov 8  }
  0x65   : > { %3239 = dma.hbm_to_vmem [thread:$0]  (!%p3961_p7), %s4011_s24, 2048, %s4015_s3, %s4019_s19, %s3790_s14, %s3790_s14, %s3791_s11  }
  0x66   : > { %s4733_s10 = sld [smem:[#allocation39_spill]]  ;;  %s551_s5 = scalar_lea.vmem [#allocation11], %s2843_s26 }
  0x67   : > { %s558_s27 = sshll.u32 %s551_s5, 4  ;;  %s4055_s6 = sadd.s32 4294967295, %s3784_s23   ;;  %s4052_s27 = int_to_ptr.vmem [resolvable:$true] %s558_s27 }
  0x68   : > { %s2835_s3 = sadd.s32 4294967294, %s3784_s23   ;;  %p182_p1 = scmp.ne.s32.totalorder %s3760_s17, %s3756_s16 }
  0x69   : > { %p4692_p4 = scmp.eq.s32.totalorder %s4055_s6, 0  ;;  %s390_s24 = ssub.s32 %s3780_s22, %s4785_s25 }
  0x6a   : > { %p391_p6 = scmp.eq.s32.totalorder %s390_s24, 0  ;;  %p403_p8 = scmp.ne.s32.totalorder %s3752_s15, %s3748_s30 }
  0x6b   : > { %p4066_p5 = por %p4692_p4, %p182_p1  ;;  %p404_p10 = scmp.eq.s32.totalorder %s4055_s6, 3 }
  0x6c   : > { %s4048_s0 = scalar_lea.hbm %s4733_s10, %s2976_s2  ;;  %s393_s2 = sadd.s32 1, %s3752_s15 }
  0x6d   : > { %s4734_s14 = scalar_select %p4066_p5, 1, 0 }
  0x6e   : > { %s4074_s26 = scalar_select %p391_p6, %s3752_s15, %s393_s2  }
  0x6f   : > { %p4076_p12 = por %p404_p10, %p403_p8  ;;  %p409_p13 = scmp.ne.s32.totalorder %s3748_s30, %s3744_s29 }
  0x70   : > { %4735 = sst [smem:[#allocation27_spill]] %s4074_s26  ;;  %p410_p11 = scmp.eq.s32.totalorder %s2835_s3, 3 }
  0x71   : > { %s4736_s11 = scalar_select %p4076_p12, 1, 0 }
  0x72   : > { %p2836_p0 = scmp.ge.s32.totalorder %s3784_s23, 1  ;;  %p417_p2 = scmp.lt.s32.totalorder %s3784_s23, 5 }
  0x73   : > { %p4084_p3 = por %p410_p11, %p409_p13  ;;  %s3792_s9 = smov [#allocation3]  }
  0x74   : > { %p4088_p1 = pnand %p2836_p0, %p417_p2  ;;  %s429_s5 = sshll.u32 %s3792_s9, 4  ;;  %s4092_s5 = int_to_ptr.vmem [resolvable:$true] %s429_s5 }
  0x75   : > { %s4737_s16 = scalar_select %p4084_p3, 1, 0 }
  0x76   : > { %s4739_s28 = scalar_select %p4088_p1, 1, 0 }
  0x77   : > { %4738 = sst [smem:[#allocation28_spill]] %s4737_s16  ;;  %p3226_p6 = pneg %p4088_p1 }
  0x78   : > { %s2840_s24 = sshll.u32 %s3957_s12, 6  ;;  %s2975_s2 = sshll.u32 %s3776_s21, 10 }
  0x79   : > { %p4100_p8 = pnand %p3226_p6, %p4692_p4  ;;  %s4741_s7 = sld [smem:[#allocation36_spill]] }
  0x7a   : > { %s502_s26 = scalar_lea.vmem [#allocation8], %s2840_s24  ;;  %s4742_s1 = sld [smem:[#allocation30_spill]] }
  0x7b   : > { %s509_s15 = sshll.u32 %s502_s26, 4  ;;  %p3568_p13 = pneg %p4100_p8  ;;  %s4109_s15 = int_to_ptr.vmem [resolvable:$true] %s509_s15 }
  0x7f   : > { %s4107_s22 = scalar_lea.hbm %s4741_s7, %s2975_s2 }
  0x80   : > { %s3566_s12 = scalar_lea.hbm %s4742_s1, 1536 }
  0x81   : > { %p3567_p10 = scmp.ne.s32.totalorder %s4742_s1, %s3566_s12  ;;  %p3573_p2 = scmp.lt.u32.totalorder %s3566_s12, %s4742_s1 }
  0x83   : > { %p3569_p11 = pnand %p3568_p13, %p3567_p10 }
  0x85   : > { %p3570_p0 = pneg %p3569_p11 }
  0x87   : > { %p3575_p6 = pnand %p3573_p2, %p3570_p0 }
  0x89   : > { %3578 = shalt.err (!%p3575_p6)
}
  0x8a   : > { %s3579_s26 = scalar_lea.vmem %s4092_s5, 1536  ;;  %p3587_p5 = scmp.lt.s32.totalorder %s4092_s5, %s4092_s5 }
  0x8b   : > { %p3580_p4 = scmp.ne.s32.totalorder %s4092_s5, %s3579_s26  ;;  %p3588_p1 = scmp.lt.s32.totalorder %s3579_s26, %s3579_s26 }
  0x8d   : > { %p3582_p3 = pnand %p3580_p4, %p3568_p13  ;;  %p3589_p7 = por %p3588_p1, %p3587_p5 }
  0x8f   : > { %p3583_p12 = pneg %p3582_p3 }
  0x91   : > { %p3590_p9 = pnand %p3589_p7, %p3583_p12 }
  0x93   : > { %3593 = shalt.err (!%p3590_p9)
}
  0x94   : > { %s3793_s29 = smov 64   ;;  %s3794_s21 = smov 4  }
  0x95   : > { %3229 = dma.hbm_to_vmem [thread:$0]  (!%p4100_p8), %s4742_s1, 1536, %s4092_s5, [#allocation4], %s3793_s29, %s3793_s29, %s3794_s21  }
  0x96   : > { %s3594_s2 = scalar_lea.hbm %s4107_s22, 1024  ;;  %p4743_p9 = scmp.ne.s32.totalorder %s4730_s4, 0 }
  0x97   : > { %p3595_p7 = scmp.ne.s32.totalorder %s4107_s22, %s3594_s2  ;;  %s3599_s8 = scalar_lea.hbm %s4741_s7, 2048 }
  0x98   : > { %p3600_p12 = scmp.lt.u32.totalorder %s4107_s22, %s4741_s7  ;;  %p3601_p3 = scmp.lt.u32.totalorder %s3599_s8, %s3594_s2 }
  0x99   : > { %p3597_p4 = pnand %p3595_p7, %p4743_p9  ;;  %p3603_p10 = scmp.lt.u32.totalorder %s3594_s2, %s4107_s22 }
  0x9a   : > { %p3602_p1 = por %p3601_p3, %p3600_p12 }
  0x9b   : > { %p3598_p5 = pneg %p3597_p4 }
  0x9c   : > { %p3604_p13 = por %p3603_p10, %p3602_p1 }
  0x9e   : > { %p3605_p11 = pnand %p3604_p13, %p3598_p5 }
  0xa0   : > { %3608 = shalt.err (!%p3605_p11)
}
  0xa1   : > { %s3609_s5 = scalar_lea.vmem %s4109_s15, 1024  ;;  %s3795_s3 = smov [#allocation8]  }
  0xa2   : > { %p3610_p8 = scmp.ne.s32.totalorder %s4109_s15, %s3609_s5  ;;  %s3614_s16 = sshll.u32 %s3795_s3, 4  ;;  %s3615_s16 = int_to_ptr.vmem [resolvable:$false] %s3614_s16 }
  0xa3   : > { %s3616_s24 = scalar_lea.vmem %s3615_s16, 2048  ;;  %p3617_p6 = scmp.lt.s32.totalorder %s4109_s15, %s3615_s16 }
  0xa4   : > { %p3612_p0 = pnand %p3610_p8, %p4743_p9  ;;  %p3618_p7 = scmp.lt.s32.totalorder %s3616_s24, %s3609_s5 }
  0xa6   : > { %p3613_p2 = pneg %p3612_p0  ;;  %p3619_p4 = por %p3618_p7, %p3617_p6 }
  0xa8   : > { %p3620_p12 = pnand %p3619_p4, %p3613_p2 }
  0xaa   : > { %3623 = shalt.err (!%p3620_p12)
}
  0xab   : > { %p4744_p5 = scmp.ne.s32.totalorder %s4727_s13, 0  ;;  %s3624_s2 = scalar_lea.hbm %s4048_s0, 2048 }
  0xac   : > { %p3625_p3 = scmp.ne.s32.totalorder %s4048_s0, %s3624_s2  ;;  %s3629_s8 = scalar_lea.hbm %s4733_s10, 4096 }
  0xad   : > { %3236 = dma.hbm_to_vmem [thread:$0]  (!%p4744_p5), %s4107_s22, 1024, %s4109_s15, %s3974_s18, %s3793_s29, %s3793_s29, %s3794_s21  }
  0xae   : > { %p3627_p1 = pnand %p3625_p3, %p4743_p9  ;;  %p3630_p13 = scmp.lt.u32.totalorder %s4048_s0, %s4733_s10 }
  0xaf   : > { %p3631_p11 = scmp.lt.u32.totalorder %s3629_s8, %s3624_s2  ;;  %p3633_p0 = scmp.lt.u32.totalorder %s3624_s2, %s4048_s0 }
  0xb0   : > { %p3628_p10 = pneg %p3627_p1 }
  0xb1   : > { %p3632_p8 = por %p3631_p11, %p3630_p13 }
  0xb3   : > { %p3634_p2 = por %p3633_p0, %p3632_p8 }
  0xb5   : > { %p3635_p6 = pnand %p3634_p2, %p3628_p10 }
  0xb7   : > { %3638 = shalt.err (!%p3635_p6)
}
  0xb8   : > { %s3639_s15 = scalar_lea.vmem %s4052_s27, 2048  ;;  %s3796_s18 = smov [#allocation11]  }
  0xb9   : > { %p3640_p7 = scmp.ne.s32.totalorder %s4052_s27, %s3639_s15  ;;  %s3644_s22 = sshll.u32 %s3796_s18, 4  ;;  %s3645_s22 = int_to_ptr.vmem [resolvable:$false] %s3644_s22 }
  0xba   : > { %s3646_s5 = scalar_lea.vmem %s3645_s22, 4096  ;;  %p3647_p3 = scmp.lt.s32.totalorder %s4052_s27, %s3645_s22 }
  0xbb   : > { %p3642_p4 = pnand %p3640_p7, %p4743_p9  ;;  %p3648_p1 = scmp.lt.s32.totalorder %s3646_s5, %s3639_s15 }
  0xbd   : > { %p3643_p12 = pneg %p3642_p4  ;;  %p3649_p13 = por %p3648_p1, %p3647_p3 }
  0xbf   : > { %p3650_p11 = pnand %p3649_p13, %p3643_p12 }
  0xc1   : > { %3653 = shalt.err (!%p3650_p11)
}
  0xc2   : > { %3242 = dma.hbm_to_vmem [thread:$0]  (!%p4744_p5), %s4048_s0, 2048, %s4052_s27, %s4019_s19, %s3793_s29, %s3793_s29, %s3794_s21  }
  0xc3   : > { %p4745_p9 = scmp.ne.s32.totalorder %s4739_s28, 0 }
  0xc4   : > { %p4746_p10 = scmp.eq.s32.totalorder (!%p4745_p9), %s4055_s6, 0 }
  0xc5   : > { %570 = sbr.rel (%p4745_p9) target bundleno = 5313 (0x14c1), region = 72 }
  0xcc   : > { %3727 = dma.done.wait (%p4746_p10), [#allocation4], 1536   ;;  %p4747_p8 = pmov %p4746_p10 }
  0xcd   : > { %s576_s4 = sand.u32 1, %s4055_s6   ;;  %s4193_s13 = sand.u32 1, %s3760_s17  }
  0xce   : > { %3729 = vsyncadd (%p4747_p8), [#allocation4], 4294965760  ;;  %s3210_s3 = smul.u32 192, %s4193_s13  ;;  %s577_s16 = scalar_lea.sflag [#allocation7], %s576_s4 }
  0xcf   : > { %p4748_p5 = scmp.ne.s32.totalorder %s4734_s14, 0 }
  0xd0   : > { %s4196_s24 = scalar_lea.vmem [#allocation6], %s3210_s3 }
  0xd1   : > { %3731 = dma.done.wait (%p4748_p5), %s577_s16, 4096  }
  0xd2   : > { %3733 = vsyncadd (%p4748_p5), %s577_s16, 4294963200  ;;  %s2851_s19 = sshll.u32 %s4193_s13, 6  ;;  %s2852_s0 = sshll.u32 %s4193_s13, 7 }
  0xd3   : > { %s4204_s27 = scalar_lea.vmem [#allocation8], %s2851_s19  ;;  %s595_s6 = scalar_lea.sflag [#allocation10], %s576_s4 }
  0xd4   : > { %s4206_s28 = scalar_lea.vmem [#allocation9], %s2852_s0 }
  0xd5   : > { %3735 = dma.done.wait (%p4748_p5), %s595_s6, 4096  }
  0xd6   : > { %3737 = vsyncadd (%p4748_p5), %s595_s6, 4294963200  ;;  %s4749_s29 = sld [smem:[#allocation21_spill]]  ;;  %s4700_s21 = sand.u32 1, %s3748_s30  }
  0xd7   : > { %s4215_s2 = sshll.u32 %s4700_s21, 1  ;;  %p689_p0 = scmp.lt.s32.totalorder %s3772_s20, 1 }
  0xd8   : > { %s2859_s25 = sshll.u32 %s3772_s20, 1  ;;  %s4750_s15 = sld [smem:[#allocation29_spill]] }
  0xd9   : > { %s690_s9 = scalar_select %p689_p0, %s3772_s20, 1 }
  0xda   : > { %s4751_s13 = sld [smem:[#allocation32_spill]]  ;;  %s4752_s19 = sld [smem:[#allocation33_spill]] }
  0xdb   : > { %s2978_s8 = sshll.u32 %s690_s9, 4  ;;  %p707_p6 = scmp.lt.s32.totalorder %s2859_s25, 3 }
  0xdc   : > { %p694_p2 = scmp.lt.s32.totalorder %s4749_s29, 1  ;;  %s4753_s10 = sld [smem:[#allocation35_spill]] }
  0xdd   : > { %s4787_s25 = smov (!%p707_p6, %s2859_s25), 3  ;;  %s4755_s3 = sld [smem:[#allocation42_spill]] }
  0xde   : > { %s695_s12 = scalar_select %p694_p2, %s4749_s29, 1 }
  0xdf   : > { %s4225_s18 = scalar_lea.vmem %s4750_s15, %s2978_s8  ;;  %s4754_s15 = sld [smem:[#allocation38_spill]] }
  0xe0   : > { %s2857_s22 = sshll.u32 %s695_s12, 3  ;;  %v4230_v0 = vld [vmem:[%s4751_s13] sm:$0xff]  ;;  %s3211_s21 = smul.u32 3, %s695_s12 }
  0xe1   : > { %s4235_s6 = scalar_lea.vmem %s4752_s19, %s2857_s22  ;;  %s2858_s1 = sshll.u32 %s695_s12, 1 }
  0xe2   : > { %s4240_s14 = scalar_lea.vmem %s4753_s10, %s3211_s21  ;;  %s2860_s5 = sshll.u32 %s4787_s25, 3 }
  0xe3   : > { %s4250_s22 = scalar_lea.vmem %s4755_s3, %s2860_s5  ;;  %s4252_s16 = scalar_lea.vmem [#allocation11], %s2852_s0 }
  0xe4   : > { %s688_s12 = scalar_lea.vmem [#allocation12], %s4215_s2  ;;  %p2861_p7 = scmp.ne.s32.totalorder %s4749_s29, 0 }
  0xe5   : > { %s4245_s17 = scalar_lea.vmem %s4754_s15, %s2858_s1  ;;  %v3356_v1 = vld [vmem:[#allocation3] sm:$0xff] (!%p2861_p7)   ;;  %v3797_v2 = vmov (!%p2861_p7), 0   ;;  %v3357_v3 = vld [vmem:[#allocation3 + $0x8] sm:$0xff] (!%p2861_p7)   ;;  %v3358_v4 = vld [vmem:[#allocation3 + $0x10] sm:$0xff] (!%p2861_p7)   ;;  %vm864_vm0 = vcmask (!%p2861_p7), 1040384   ;;  %vm819_vm1 = vcmask (!%p2861_p7), 523264   ;;  %v901_v58 = vlaneseq (!%p2861_p7) }
  0xe6   : > { %718 = sbr.rel (%p2861_p7) target bundleno = 807 (0x327), region = 96  ;;  %823 = vmatprep.subr.bf16.mxu0 (!%p2861_p7), %v3797_v2  ;;  %v3359_v5 = vld [vmem:[#allocation3 + $0x18] sm:$0xff] (!%p2861_p7)   ;;  %s4756_s10 = sld [smem:[#allocation31_spill]] (!%p2861_p7)  ;;  %v3360_v10 = vld [vmem:[#allocation3 + $0x20] sm:$0xff] (!%p2861_p7)   ;;  %v3361_v11 = vld [vmem:[#allocation3 + $0x28] sm:$0xff] (!%p2861_p7)   ;;  %vm918_vm2 = vcmask (!%p2861_p7), 1047556  }
  0xe7   : > { %824 = vmatpush1.bf16.msra.mxu0 (!%p2861_p7), %v3356_v1  ;;  %v720_v6 = vld [vmem:[%s4225_s18 + $0x8] sm:$0xff] (!%p2861_p7)  ;;  %v3362_v12 = vld [vmem:[#allocation3 + $0x30] sm:$0xff] (!%p2861_p7)   ;;  %v3364_v14 = vld [vmem:[#allocation3 + $0x40] sm:$0xff] (!%p2861_p7)   ;;  %vm887_vm3 = vcmask (!%p2861_p7), 1043456   ;;  %v881_v50 = vrot.slane (!%p2861_p7), %v4230_v0, 1  ;;  %v902_v61 = vshrl.u32 (!%p2861_p7), %v901_v58, 7 }
  0xe8   : > { %825 = vmatprep.subr.bf16.mxu0 (!%p2861_p7), %v3797_v2  ;;  %v722_v8 = vpack.c.bf16 (!%p2861_p7), %v720_v6, %v720_v6  ;;  %v3363_v13 = vld [vmem:[#allocation3 + $0x38] sm:$0xff] (!%p2861_p7)   ;;  %v3365_v15 = vld [vmem:[#allocation3 + $0x48] sm:$0xff] (!%p2861_p7)   ;;  %v3366_v16 = vld [vmem:[#allocation3 + $0x50] sm:$0xff] (!%p2861_p7)  }
  0xe9   : > { %v3367_v17 = vld [vmem:[#allocation3 + $0x58] sm:$0xff] (!%p2861_p7)   ;;  %v719_v18 = vld [vmem:[%s4225_s18] sm:$0xff] (!%p2861_p7)  ;;  %v903_v62 = vsub.s32 (!%p2861_p7), 0, %v902_v61  ;;  %v908_v63 = vsub.s32 (!%p2861_p7), 1, %v902_v61 }
  0xea   : > { %2874 = vmatprep.mubr.msk.bf16.mxu0 (!%p2861_p7), %vm819_vm1, %v722_v8  ;;  %v721_v19 = vpack.c.bf16 (!%p2861_p7), %v719_v18, %v719_v18 }
  0xeb   : > { %826 = vmatpush1.bf16.msra.mxu0 (!%p2861_p7), %v3357_v3  ;;  %v904_v1 = vrot.slane (!%p2861_p7), %v4230_v0, %v903_v62 }
  0xec   : > { %827 = vmatprep.subr.bf16.mxu0 (!%p2861_p7), %v3797_v2  ;;  %v863_v7 = vld [vmem:[%s4756_s10] sm:$0x1] (!%p2861_p7)  ;;  %v913_v22 = vld [vmem:[%s4756_s10 + $0x1] sm:$0xf] (!%p2861_p7) }
  0xed   : > { %v865_v9 = vsel %vm864_vm0, %v863_v7, 0.0  ;;  %v915_v24 = vrot.slane %v913_v22, 4  ;;  %v885_v25 = vld [vmem:[%s4756_s10 + $0x1] sm:$0xf] }
  0xee   : > { %866 = vadd.xlane.f32.xlu0 %v865_v9 }
  0xef   : > { %828 = vmatpush1.bf16.msra.mxu0 %v3358_v4  ;;  %v909_v4 = vrot.slane %v4230_v0, %v908_v63 }
  0xf0   : > { %829 = vmatprep.subr.bf16.mxu0 %v3797_v2 }
  0xf3   : > { %830 = vmatpush1.bf16.msra.mxu0 %v3359_v5 }
  0xf4   : > { %831 = vmatprep.subr.bf16.mxu0 %v3797_v2 }
  0xf7   : > { %832 = vmatpush1.bf16.msra.mxu0 %v3360_v10 }
  0xf8   : > { %833 = vmatprep.subr.bf16.mxu0 %v3797_v2 }
  0xfb   : > { %834 = vmatpush1.bf16.msra.mxu0 %v3361_v11 }
  0xfc   : > { %835 = vmatprep.subr.bf16.mxu0 %v3797_v2 }
  0xff   : > { %836 = vmatpush1.bf16.msra.mxu0 %v3362_v12 }
 0x100   : > { %837 = vmatprep.subr.bf16.mxu0 %v3797_v2 }
 0x103   : > { %838 = vmatpush1.bf16.msra.mxu0 %v3363_v13 }
 0x104   : > { %839 = vmatprep.subr.bf16.mxu0 %v3797_v2 }
 0x107   : > { %840 = vmatpush1.bf16.msra.mxu0 %v3364_v14 }
 0x108   : > { %841 = vmatprep.subr.bf16.mxu0 %v3797_v2 }
 0x10b   : > { %842 = vmatpush1.bf16.msra.mxu0 %v3365_v15 }
 0x10c   : > { %843 = vmatprep.subr.bf16.mxu0 %v3797_v2 }
 0x10f   : > { %844 = vmatpush1.bf16.msra.mxu0 %v3366_v16 }
 0x110   : > { %845 = vmatprep.subr.bf16.mxu0 %v3797_v2 }
 0x113   : > { %846 = vmatpush1.bf16.msra.mxu0 %v3367_v17 }
 0x116   : > { %856 = vmatmul.mubr.bf16.vlgmr.msra.gmra.mrb[0].mxu0 %v721_v19 }
 0x17b   : > { %v867_v20 = vpop.xlane.xlu0 %866 }
 0x17c   : > { %v869_v21 = vmul.f32 0.0078125, %v867_v20 }
 0x17e   : > { %v870_v23 = vsub.f32 %v863_v7, %v869_v21 }
 0x180   : > { %v871_v30 = vmul.f32 %v870_v23, %v870_v23 }
 0x182   : > { %v872_v35 = vsel %vm864_vm0, %v871_v30, 0.0 }
 0x1e9   : > { %v857_v26 = vpop.f32.mrb[0].mxu0 }
 0x1ea   : > { %v886_v27 = vadd.f32 %v885_v25, %v857_v26  ;;  %v859_v28 = vpop.f32.mrb[1].mxu0  ;;  %v917_v29 = vadd.f32 %v915_v24, %v857_v26 }
 0x1eb   : > { %v860_v31 = vpop.f32.mrb[2].mxu0 }
 0x1ec   : > { %v861_v32 = vpop.f32.mrb[3].mxu0  ;;  %v919_v33 = vsel %vm918_vm2, %v917_v29, 0.0  ;;  %v888_v34 = vsel %vm887_vm3, %v886_v27, 0.0 }
 0x1ed   : > { %920 = vadd.xlane.f32.xlu1 %v919_v33  ;;  %889 = vadd.xlane.f32.xlu0 %v888_v34 }
 0x1f1   : > { %873 = vadd.xlane.f32.xlu1 %v872_v35 }
 0x27a   : > { %v921_v36 = vpop.xlane.xlu1 %920  ;;  %v890_v37 = vpop.xlane.xlu0 %889 }
 0x27b   : > { %v922_v38 = vmul.f32 0.0078125, %v921_v36  ;;  %v891_v39 = vmul.f32 0.0078125, %v890_v37 }
 0x27d   : > { %v923_v40 = vsub.f32 %v917_v29, %v922_v38  ;;  %v892_v41 = vsub.f32 %v886_v27, %v891_v39 }
 0x27e   : > { %v874_v42 = vpop.xlane.xlu1 %873 }
 0x27f   : > { %v875_v43 = vmul.f32 0.0078125, %v874_v42  ;;  %v924_v44 = vmul.f32 %v923_v40, %v923_v40  ;;  %v893_v45 = vmul.f32 %v892_v41, %v892_v41 }
 0x281   : > { %v876_v46 = vadd.f32 1e-05, %v875_v43  ;;  %v925_v47 = vsel %vm918_vm2, %v924_v44, 0.0  ;;  %v894_v48 = vsel %vm887_vm3, %v893_v45, 0.0 }
 0x282   : > { %926 = vadd.xlane.f32.xlu1 %v925_v47  ;;  %895 = vadd.xlane.f32.xlu0 %v894_v48 }
 0x283   : > { %3368 = vrsqrt.f32 %v876_v46 }
 0x28d   : > { %v3369_v49 = vpop.eup %3368 }
 0x28e   : > { %v878_v51 = vmul.f32 %v3369_v49, %v870_v23 }
 0x290   : > { %v879_v52 = vmul.f32 %v878_v51, %v4230_v0 }
 0x292   : > { %v883_v53 = vadd.f32 %v881_v50, %v879_v52 }
 0x294   : > { %884 = vst [vmem:[#allocation2] sm:$0x1] %v883_v53  ;;  %912 = vst [vmem:[#allocation2 + $0x5] sm:$0x1] %v883_v53 }
 0x30f   : > { %v927_v54 = vpop.xlane.xlu1 %926  ;;  %v896_v55 = vpop.xlane.xlu0 %895 }
 0x310   : > { %v928_v56 = vmul.f32 0.0078125, %v927_v54  ;;  %v897_v57 = vmul.f32 0.0078125, %v896_v55 }
 0x312   : > { %v929_v59 = vadd.f32 1e-05, %v928_v56  ;;  %v898_v60 = vadd.f32 1e-05, %v897_v57 }
 0x314   : > { %3370 = vrsqrt.f32 %v929_v59 }
 0x315   : > { %3372 = vrsqrt.f32 %v898_v60 }
 0x31e   : > { %v3371_v2 = vpop.eup %3370 }
 0x31f   : > { %v3373_v3 = vpop.eup %3372  ;;  %v931_v5 = vmul.f32 %v3371_v2, %v923_v40 }
 0x320   : > { %v900_v6 = vmul.f32 %v3373_v3, %v892_v41 }
 0x321   : > { %v932_v7 = vmul.f32 %v931_v5, %v904_v1 }
 0x322   : > { %v905_v8 = vmul.f32 %v904_v1, %v900_v6 }
 0x323   : > { %v933_v9 = vadd.f32 %v932_v7, %v909_v4 }
 0x324   : > { %v910_v10 = vadd.f32 %v909_v4, %v905_v8 }
 0x325   : > { %934 = vst [vmem:[#allocation2 + $0x2] sm:$0xf0] %v933_v9 }
 0x326   : > { %911 = vst [vmem:[#allocation2 + $0x1] sm:$0xf] %v910_v10 }
 0x327 PF: > { %vm956_vm4 = vcmask 1041408   ;;  %v3374_v14 = vld [vmem:[%s4196_s24 + $0x4] ss:$12 sps:$4 sm:$0xff]   ;;  %v3376_v15 = vld [vmem:[%s4196_s24] ss:$12 sps:$4 sm:$0xff]   ;;  %v3798_v16 = vmov 0.0   ;;  %v980_v53 = vlaneseq }
 0x328   : > { %3059 = vmatprep.subr.bf16.mxu1 %v3798_v16  ;;  %v3377_v17 = vld [vmem:[%s4196_s24 + $0x8] ss:$12 sps:$4 sm:$0xff]   ;;  %1170 = vmatprep.subr.bf16.mxu0 %v3374_v14  ;;  %v3380_v28 = vld [vmem:[%s4196_s24 + $0x18] ss:$12 sps:$4 sm:$0xff]   ;;  %v3381_v29 = vld [vmem:[%s4196_s24 + $0x20] ss:$12 sps:$4 sm:$0xff]  }
 0x329   : > { %v3378_v18 = vld [vmem:[%s4196_s24 + $0x1c] ss:$12 sps:$4 sm:$0xff]   ;;  %1171 = vmatpush1.bf16.msra.mxu0 %v3376_v15  ;;  %3060 = vmatpush3.bf16.msra.mxu1 %v3377_v17  ;;  %v3382_v30 = vld [vmem:[%s4196_s24 + $0x34] ss:$12 sps:$4 sm:$0xff]   ;;  %v3385_v32 = vld [vmem:[%s4196_s24 + $0x38] ss:$12 sps:$4 sm:$0xff]  }
 0x32a   : > { %1172 = vmatprep.subr.bf16.mxu0 %v3378_v18  ;;  %3061 = vmatprep.subr.bf16.mxu1 %v3798_v16  ;;  %v3384_v31 = vld [vmem:[%s4196_s24 + $0x30] ss:$12 sps:$4 sm:$0xff]   ;;  %v3386_v33 = vld [vmem:[%s4196_s24 + $0x4c] ss:$12 sps:$4 sm:$0xff]   ;;  %v3388_v34 = vld [vmem:[%s4196_s24 + $0x48] ss:$12 sps:$4 sm:$0xff]  }
 0x32b   : > { %v3389_v35 = vld [vmem:[%s4196_s24 + $0x50] ss:$12 sps:$4 sm:$0xff]   ;;  %v3392_v37 = vld [vmem:[%s4196_s24 + $0x60] ss:$12 sps:$4 sm:$0xff]   ;;  %v3393_v38 = vld [vmem:[%s4196_s24 + $0x68] ss:$12 sps:$4 sm:$0xff]  }
 0x32c   : > { %v4277_v11 = vld [vmem:[#allocation2 + $0x8] sm:$0x3]  ;;  %v3390_v36 = vld [vmem:[%s4196_s24 + $0x64] ss:$12 sps:$4 sm:$0xff]   ;;  %v3394_v39 = vld [vmem:[%s4196_s24 + $0x7c] ss:$12 sps:$4 sm:$0xff]  }
 0x32d   : > { %v957_v12 = vsel %vm956_vm4, %v4277_v11, 0.0  ;;  %v4281_v13 = vld [vmem:[#allocation2] sm:$0xff]  ;;  %1173 = vmatpush1.bf16.msra.mxu0 %v3380_v28  ;;  %3062 = vmatpush3.bf16.msra.mxu1 %v3381_v29  ;;  %v3396_v40 = vld [vmem:[%s4196_s24 + $0x78] ss:$12 sps:$4 sm:$0xff]   ;;  %v3397_v41 = vld [vmem:[%s4196_s24 + $0x80] ss:$12 sps:$4 sm:$0xff]  }
 0x32e   : > { %958 = vadd.xlane.f32.xlu0 %v957_v12  ;;  %3063 = vmatprep.subr.bf16.mxu1 %v3798_v16  ;;  %v3398_v42 = vld [vmem:[%s4196_s24 + $0x94] ss:$12 sps:$4 sm:$0xff]   ;;  %v3799_v43 = vmov 0   ;;  %vm3800_vm5 = vmmov 0   ;;  %v3400_v44 = vld [vmem:[%s4196_s24 + $0x90] ss:$12 sps:$4 sm:$0xff]  }
 0x32f   : > { %1174 = vmatprep.subr.bf16.mxu0 %v3382_v30  ;;  %1202 = vmatprep.mubr.bf16.mxu0 %v3799_v43  ;;  %v3401_v45 = vld [vmem:[%s4196_s24 + $0x98] ss:$12 sps:$4 sm:$0xff]   ;;  %v3404_v47 = vld [vmem:[%s4196_s24 + $0xa8] ss:$12 sps:$4 sm:$0xff]   ;;  %v3405_v48 = vld [vmem:[%s4196_s24 + $0xb0] ss:$12 sps:$4 sm:$0xff]  }
 0x330   : > { %3075 = vmatprep.mubr.msk.bf16.mxu1 %vm3800_vm5, %v3798_v16  ;;  %v3402_v46 = vld [vmem:[%s4196_s24 + $0xac] ss:$12 sps:$4 sm:$0xff]   ;;  %v4332_v56 = vshrl.u32 %v980_v53, 7  ;;  %v4338_v58 = vld [vmem:[%s4235_s6] sm:$0xff]  ;;  %vm1322_vm6 = vcmask 1042432   ;;  %v3801_v15 = vmov 65535  }
 0x331   : > { %1175 = vmatpush1.bf16.msra.mxu0 %v3384_v31  ;;  %3064 = vmatpush3.bf16.msra.mxu1 %v3385_v32  ;;  %v1025_v9 = vld [vmem:[%s4240_s14] sm:$0x7]  ;;  %v1323_v17 = vsel %vm956_vm4, 4294967295, %v3801_v15  ;;  %vm1258_vm7 = vcmask 523264   ;;  %s3802_s24 = smov 64   ;;  %vm1305_vm8 = vcmask 36864  }
 0x332   : > { %954 = vadd.xlane.f32.xlu0 %v4281_v13  ;;  %3065 = vmatprep.subr.bf16.mxu1 %v3798_v16  ;;  %v4335_v57 = vsub.s32 0, %v4332_v56  ;;  %v4344_v62 = vsub.s32 1, %v4332_v56  ;;  %v4354_v8 = vsub.s32 2, %v4332_v56  ;;  %vm1318_vm9 = vcmask 39936  }
 0x333   : > { %1176 = vmatprep.subr.bf16.mxu0 %v3386_v33  ;;  %vm1950_vm10 = vcmask 1044480  }
 0x334   : > { %v983_v61 = vrot.slane %v4338_v58, %v4335_v57  ;;  %v989_v3 = vrot.slane %v4338_v58, %v4344_v62  ;;  %v1030_v10 = vrot.slane %v1025_v9, %v4335_v57  ;;  %v1038_v12 = vrot.slane %v1025_v9, %v4354_v8 }
 0x335   : > { %1177 = vmatpush1.bf16.msra.mxu0 %v3388_v34  ;;  %3066 = vmatpush3.bf16.msra.mxu1 %v3389_v35  ;;  %v1034_v14 = vrot.slane %v1025_v9, %v4344_v62 }
 0x336   : > { %3067 = vmatprep.subr.bf16.mxu1 %v3798_v16  ;;  %1178 = vmatprep.subr.bf16.mxu0 %v3390_v36 }
 0x339   : > { %1179 = vmatpush1.bf16.msra.mxu0 %v3392_v37  ;;  %3068 = vmatpush3.bf16.msra.mxu1 %v3393_v38 }
 0x33a   : > { %1180 = vmatprep.subr.bf16.mxu0 %v3394_v39  ;;  %3069 = vmatprep.subr.bf16.mxu1 %v3798_v16 }
 0x33d   : > { %1181 = vmatpush1.bf16.msra.mxu0 %v3396_v40  ;;  %3070 = vmatpush3.bf16.msra.mxu1 %v3397_v41 }
 0x33e   : > { %1182 = vmatprep.subr.bf16.mxu0 %v3398_v42  ;;  %3071 = vmatprep.subr.bf16.mxu1 %v3798_v16 }
 0x341   : > { %1183 = vmatpush1.bf16.msra.mxu0 %v3400_v44  ;;  %3072 = vmatpush3.bf16.msra.mxu1 %v3401_v45 }
 0x342   : > { %1184 = vmatprep.subr.bf16.mxu0 %v3402_v46  ;;  %3073 = vmatprep.subr.bf16.mxu1 %v3798_v16 }
 0x345   : > { %1185 = vmatpush1.bf16.msra.mxu0 %v3404_v47  ;;  %3074 = vmatpush3.bf16.msra.mxu1 %v3405_v48 }
 0x346   : > { %3079 = vmatprep.subr.bf16.mxu0 %v3798_v16  ;;  %3085 = vmatprep.subr.bf16.mxu1 %v3798_v16 }
 0x3bb   : > { %v959_v19 = vpop.xlane.xlu0 %958 }
 0x3bc   : > { %v962_v20 = vmul.f32 0.0078125, %v959_v19 }
 0x3be   : > { %v4291_v23 = vsub.f32 %v4277_v11, %v962_v20 }
 0x3bf   : > { %v955_v21 = vpop.xlane.xlu0 %954 }
 0x3c0   : > { %v961_v22 = vmul.f32 0.0078125, %v955_v21  ;;  %v966_v26 = vmul.f32 %v4291_v23, %v4291_v23 }
 0x3c2   : > { %v4294_v24 = vsub.f32 %v4281_v13, %v961_v22  ;;  %v969_v27 = vsel %vm956_vm4, %v966_v26, 0.0 }
 0x3c4   : > { %v965_v25 = vmul.f32 %v4294_v24, %v4294_v24 }
 0x3c6   : > { %967 = vadd.xlane.f32.xlu1 %v965_v25 }
 0x3ca   : > { %970 = vadd.xlane.f32.xlu1 %v969_v27 }
 0x453   : > { %v968_v49 = vpop.xlane.xlu1 %967 }
 0x454   : > { %v972_v50 = vmul.f32 0.0078125, %v968_v49 }
 0x456   : > { %v974_v51 = vadd.f32 1e-05, %v972_v50 }
 0x457   : > { %v971_v52 = vpop.xlane.xlu1 %970 }
 0x458   : > { %3454 = vrsqrt.f32 %v974_v51  ;;  %v973_v54 = vmul.f32 0.0078125, %v971_v52 }
 0x45a   : > { %v975_v55 = vadd.f32 1e-05, %v973_v54 }
 0x45c   : > { %3456 = vrsqrt.f32 %v975_v55 }
 0x462   : > { %v3455_v59 = vpop.eup %3454 }
 0x463   : > { %v978_v60 = vmul.f32 %v3455_v59, %v4294_v24  ;;  %v4361_v24 = vsel %vm1322_vm6, %v1323_v17, 0 }
 0x465   : > { %v984_v2 = vmul.f32 %v983_v61, %v978_v60 }
 0x466   : > { %v3457_v63 = vpop.eup %3456 }
 0x467   : > { %v979_v1 = vmul.f32 %v3457_v63, %v4291_v23  ;;  %v990_v5 = vadd.f32 %v989_v3, %v984_v2 }
 0x469   : > { %v985_v4 = vmul.f32 %v983_v61, %v979_v1 }
 0x46b   : > { %v991_v6 = vadd.f32 %v989_v3, %v985_v4 }
 0x46d   : > { %v992_v7 = vpack.c.bf16 %v991_v6, %v990_v5 }
 0x46f   : > { %1203 = vmatmul.mubr.bf16.vlgmr.msra.gmra.mrb[0].mxu0 %v992_v7  ;;  %3076 = vmatmul.mubr.bf16.vlgmr.msra.gmra.mrb[0].mxu1 %v992_v7 }
 0x470   : > { %3081 = vmatprep.mubr.msk.bf16.mxu0 %vm3800_vm5, %v3798_v16  ;;  %3087 = vmatprep.mubr.msk.bf16.mxu1 %vm3800_vm5, %v3798_v16 }
 0x542   : > { %v1204_v18 = vpop.f32.mrb[0].mxu0  ;;  %v1247_v19 = vpop.f32.mrb[0].mxu1 }
 0x543   : > { %v1205_v20 = vadd.f32 %v1204_v18, %v1030_v10  ;;  %v1248_v21 = vadd.f32 %v1247_v19, %v1038_v12  ;;  %v1206_v22 = vpop.f32.mrb[1].mxu0  ;;  %v3077_v23 = vpop.f32.mrb[1].mxu1  ;;  %v4391_v18 = vld [vmem:[%s4204_s27] sm:$0xff]   ;;  %v4395_v19 = vld [vmem:[%s4204_s27 + $0x8] sm:$0xff]  }
 0x544   : > { %v1207_v25 = vadd.f32 %v1206_v22, %v1034_v14  ;;  %v1208_v26 = vpop.f32.mrb[2].mxu0  ;;  %v1250_v27 = vpop.f32.mrb[2].mxu1 }
 0x545   : > { %v1254_v28 = vmul.f32 0.125, %v1205_v20  ;;  %v1257_v29 = vpack.c.bf16 %v1248_v21, %v1248_v21  ;;  %v1209_v30 = vadd.f32 %v1208_v26, %v1030_v10  ;;  %v1251_v31 = vadd.f32 %v1250_v27, %v1038_v12  ;;  %v1210_v32 = vpop.f32.mrb[3].mxu0  ;;  %v3078_v33 = vpop.f32.mrb[3].mxu1  ;;  %v4400_v20 = vld [vmem:[%s4204_s27 + $0x10] sm:$0xff]   ;;  %v4411_v27 = vld [vmem:[%s4204_s27 + $0x18] sm:$0xff]  }
 0x546   : > { %v1256_v34 = vpack.c.bf16 %v1207_v25, %v1207_v25  ;;  %v1211_v35 = vadd.f32 %v1210_v32, %v1034_v14  ;;  %v3411_v33 = vld [vmem:[%s4204_s27 + $0x28] sm:$0xff]  }
 0x547   : > { %v1255_v36 = vpack.c.bf16 %v1254_v28, %v1254_v28  ;;  %v1326_v37 = vand.u32 %v4361_v24, %v1257_v29  ;;  %v1617_v38 = vmul.f32 0.125, %v1209_v30  ;;  %v4364_v39 = vpack.c.bf16 %v1251_v31, %v1248_v21  ;;  %v3410_v31 = vld [vmem:[%s4204_s27 + $0x20] sm:$0xff]  }
 0x548   : > { %v4366_v40 = vpack.c.bf16 %v1211_v35, %v1207_v25  ;;  %1373 = vrot.lane.b32.xlu0 %v1256_v34, %s3802_s24  ;;  %v1263_v41 = vsel %vm1258_vm7, %v1256_v34, 0  ;;  %v3412_v34 = vld [vmem:[%s4204_s27 + $0x30] sm:$0xff]   ;;  %v3413_v35 = vld [vmem:[%s4204_s27 + $0x38] sm:$0xff]  }
 0x549   : > { %v1618_v42 = vpack.c.bf16 %v1617_v38, %v1254_v28  ;;  %3080 = vmatpush3.bf16.xpose.msra.mxu0 %v1263_v41  ;;  %3086 = vmatpush3.bf16.msra.mxu1 %v1326_v37 }
 0x54a   : > { %1370 = vrot.lane.b32.xlu1 %v1255_v36, %s3802_s24  ;;  %3091 = vmatprep.subr.bf16.mxu0 %v3798_v16 }
 0x54b   : > { %3097 = vmatprep.subr.bf16.mxu1 %v3798_v16  ;;  %v1622_v3 = vshrl.u32 %v1618_v42, 16  ;;  %v1625_v4 = vshll.u32 %v1618_v42, 16 }
 0x54d   : > { %v1624_v5 = vrot.slane %v1622_v3, 2  ;;  %v1627_v6 = vrot.slane %v1625_v4, 3 }
 0x54f   : > { %v4385_v7 = vor.u32 %v1627_v6, %v1624_v5 }
 0x550   : > { %3082 = vmatmul.mubr.msk.bf16.vlgmr.msra.gmra.mrb[4].mxu0 %vm1258_vm7, %v1255_v36 }
 0x551   : > { %3093 = vmatprep.mubr.msk.bf16.mxu0 %vm3800_vm5, %v3798_v16 }
 0x5ba   : > { %v1374_v44 = vpop.permute.xlu0 %1373 }
 0x5bb   : > { %v1379_v45 = vsel %vm1258_vm7, %v1374_v44, 0  ;;  %v1630_v44 = vshrl.u32 %v4366_v40, 16 }
 0x5bc   : > { %3092 = vmatpush3.bf16.xpose.msra.mxu0 %v1379_v45  ;;  %v1371_v46 = vpop.permute.xlu1 %1370  ;;  %v1633_v45 = vshll.u32 %v4366_v40, 16 }
 0x5bd   : > { %3115 = vmatprep.subr.bf16.mxu0 %v3798_v16 }
 0x5c3   : > { %3094 = vmatmul.mubr.msk.bf16.vlgmr.msra.gmra.mrb[8].mxu0 %vm1258_vm7, %v1371_v46  ;;  %v1632_v46 = vrot.slane %v1630_v44, 2 }
 0x5c4   : > { %3123 = vmatprep.mubr.msk.bf16.mxu0 %vm3800_vm5, %v3798_v16  ;;  %3116 = vmatpush3.bf16.msra.mxu0 %v4391_v18 }
 0x5c5   : > { %3117 = vmatprep.subr.bf16.mxu0 %v3798_v16 }
 0x5c8   : > { %3118 = vmatpush3.bf16.msra.mxu0 %v4395_v19 }
 0x5c9   : > { %3119 = vmatprep.subr.bf16.mxu0 %v3798_v16 }
 0x5cc   : > { %3120 = vmatpush3.bf16.msra.mxu0 %v4400_v20 }
 0x5cd   : > { %3121 = vmatprep.subr.bf16.mxu0 %v3798_v16 }
 0x5d0   : > { %3122 = vmatpush3.bf16.msra.mxu0 %v4411_v27 }
 0x5d1   : > { %3151 = vmatprep.subr.bf16.mxu0 %v3798_v16 }
 0x623   : > { %v1299_v47 = vpop.f32.mrb[4].mxu0 }
 0x624   : > { %v3083_v48 = vpop.f32.mrb[5].mxu0  ;;  %v1306_v49 = vsel %vm1305_vm8, %v1299_v47, -inf }
 0x625   : > { %1307 = vmax.xlane.f32.xlu1 %v1306_v49  ;;  %v1302_v50 = vpop.f32.mrb[6].mxu0  ;;  %v1696_v48 = vshrl.u32 %v4364_v39, 16  ;;  %v1699_v49 = vshll.u32 %v4364_v39, 16 }
 0x626   : > { %v3084_v51 = vpop.f32.mrb[7].mxu0 }
 0x696   : > { %v1415_v52 = vpop.f32.mrb[8].mxu0 }
 0x697   : > { %v3095_v53 = vpop.f32.mrb[9].mxu0  ;;  %v1421_v54 = vsel %vm1305_vm8, %v1415_v52, -inf }
 0x698   : > { %1422 = vmax.xlane.f32.xlu0 %v1421_v54  ;;  %v1418_v55 = vpop.f32.mrb[10].mxu0  ;;  %v1698_v54 = vrot.slane %v1696_v48, 2 }
 0x699   : > { %v3096_v59 = vpop.f32.mrb[11].mxu0  ;;  %v1701_v55 = vrot.slane %v1699_v49, 3 }
 0x69b   : > { %v1702_v40 = vor.u32 %v1701_v55, %v1698_v54 }
 0x69d   : > { %v1707_v39 = vand.u32 %v1702_v40, %v4361_v24 }
 0x6b2   : > { %v1308_v60 = vpop.xlane.xlu1 %1307 }
 0x6b3   : > { %v1309_v61 = vsub.f32 %v1299_v47, %v1308_v60  ;;  %v1635_v47 = vrot.slane %v1633_v45, 3 }
 0x6b5   : > { %v1310_v63 = vmul.f32 1.442695, %v1309_v61  ;;  %v1636_v50 = vor.u32 %v1635_v47, %v1632_v46 }
 0x6b7   : > { %3458 = vpow2.f32 %v1310_v63  ;;  %v1641_v61 = vsel %vm1258_vm7, %v1636_v50, 0 }
 0x6c1   : > { %v3459_v1 = vpop.eup %3458 }
 0x6c2   : > { %v1312_v2 = vsel %vm1305_vm8, %v3459_v1, 0.0 }
 0x6c3   : > { %1313 = vadd.xlane.f32.xlu0 %v1312_v2 }
 0x6d9   : > { %1434 = vrot.lane.b32.xlu0 %v1257_v29, %s3802_s24 }
 0x6dd   : > { %1750 = vrot.lane.b32.xlu0 %v4385_v7, %s3802_s24 }
 0x725   : > { %v1423_v9 = vpop.xlane.xlu0 %1422 }
 0x726   : > { %v1424_v10 = vsub.f32 %v1415_v52, %v1423_v9 }
 0x728   : > { %v1425_v12 = vmul.f32 1.442695, %v1424_v10 }
 0x72a   : > { %3460 = vpow2.f32 %v1425_v12 }
 0x734   : > { %v3461_v14 = vpop.eup %3460 }
 0x735   : > { %v1427_v15 = vsel %vm1305_vm8, %v3461_v14, 0.0 }
 0x736   : > { %1428 = vadd.xlane.f32.xlu1 %v1427_v15 }
 0x750   : > { %v1314_v17 = vpop.xlane.xlu0 %1313 }
 0x751   : > { %3462 = vrcp.f32 %v1314_v17 }
 0x754   : > { %v1435_v23 = vpop.permute.xlu0 %1434 }
 0x755   : > { %v1440_v26 = vand.u32 %v1435_v23, %v4361_v24 }
 0x75b   : > { %v3463_v21 = vpop.eup %3462 }
 0x75c   : > { %v1316_v22 = vmul.f32 %v3463_v21, %v3459_v1 }
 0x75e   : > { %v1317_v25 = vpack.c.bf16 %v1316_v22, %v1316_v22 }
 0x760   : > { %3088 = vmatmul.mubr.msk.bf16.vlgmr.msra.gmra.mrb[4].mxu1 %vm1318_vm9, %v1317_v25 }
 0x761   : > { %3098 = vmatpush3.bf16.msra.mxu1 %v1440_v26  ;;  %3099 = vmatprep.mubr.msk.bf16.mxu1 %vm3800_vm5, %v3798_v16 }
 0x762   : > { %3103 = vmatprep.subr.bf16.mxu1 %v3798_v16 }
 0x7c3   : > { %v1429_v28 = vpop.xlane.xlu1 %1428 }
 0x7c4   : > { %3464 = vrcp.f32 %v1429_v28 }
 0x7ce   : > { %v3465_v29 = vpop.eup %3464 }
 0x7cf   : > { %v1431_v30 = vmul.f32 %v3465_v29, %v3461_v14 }
 0x7d1   : > { %v1432_v32 = vpack.c.bf16 %v1431_v30, %v1431_v30 }
 0x7d3   : > { %3100 = vmatmul.mubr.msk.bf16.vlgmr.msra.gmra.mrb[8].mxu1 %vm1318_vm9, %v1432_v32 }
 0x7d4   : > { %3104 = vmatpush3.bf16.msra.mxu1 %v3410_v31  ;;  %3111 = vmatprep.mubr.msk.bf16.mxu1 %vm3800_vm5, %v3798_v16 }
 0x7d5   : > { %3105 = vmatprep.subr.bf16.mxu1 %v3798_v16 }
 0x7d8   : > { %3106 = vmatpush3.bf16.msra.mxu1 %v3411_v33 }
 0x7d9   : > { %3107 = vmatprep.subr.bf16.mxu1 %v3798_v16 }
 0x7dc   : > { %3108 = vmatpush3.bf16.msra.mxu1 %v3412_v34 }
 0x7dd   : > { %3109 = vmatprep.subr.bf16.mxu1 %v3798_v16 }
 0x7e0   : > { %3110 = vmatpush3.bf16.msra.mxu1 %v3413_v35 }
 0x7e1   : > { %3127 = vmatprep.subr.bf16.mxu1 %v3798_v16 }
 0x833   : > { %v1362_v36 = vpop.f32.mrb[4].mxu1 }
 0x834   : > { %v1368_v37 = vpack.c.bf16 %v1362_v36, %v1362_v36  ;;  %v3089_v38 = vpop.f32.mrb[5].mxu1 }
 0x835   : > { %v1365_v41 = vpop.f32.mrb[6].mxu1 }
 0x836   : > { %v3090_v42 = vpop.f32.mrb[7].mxu1  ;;  %3124 = vmatmul.mubr.msk.bf16.vlgmr.msra.gmra.mrb[12].mxu0 %vm1258_vm7, %v1368_v37 }
 0x837   : > { %3152 = vmatpush3.bf16.msra.mxu0 %v3410_v31  ;;  %3159 = vmatprep.mubr.msk.bf16.mxu0 %vm3800_vm5, %v3798_v16 }
 0x838   : > { %3153 = vmatprep.subr.bf16.mxu0 %v3798_v16 }
 0x83b   : > { %3154 = vmatpush3.bf16.msra.mxu0 %v3411_v33 }
 0x83c   : > { %3155 = vmatprep.subr.bf16.mxu0 %v3798_v16 }
 0x83f   : > { %3156 = vmatpush3.bf16.msra.mxu0 %v3412_v34  ;;  %v1751_v34 = vpop.permute.xlu0 %1750 }
 0x840   : > { %3157 = vmatprep.subr.bf16.mxu0 %v3798_v16 }
 0x843   : > { %3158 = vmatpush3.bf16.msra.mxu0 %v3413_v35 }
 0x844   : > { %3163 = vmatprep.subr.bf16.mxu0 %v3798_v16 }
 0x8a6   : > { %v1476_v51 = vpop.f32.mrb[8].mxu1 }
 0x8a7   : > { %v1482_v52 = vpack.c.bf16 %v1476_v51, %v1476_v51  ;;  %v3101_v53 = vpop.f32.mrb[9].mxu1 }
 0x8a8   : > { %v1479_v59 = vpop.f32.mrb[10].mxu1 }
 0x8a9   : > { %v3102_v60 = vpop.f32.mrb[11].mxu1  ;;  %3112 = vmatmul.mubr.msk.bf16.vlgmr.msra.gmra.mrb[12].mxu1 %vm1258_vm7, %v1482_v52 }
 0x8aa   : > { %3128 = vmatpush3.bf16.xpose.msra.mxu1 %v1641_v61  ;;  %3129 = vmatprep.mubr.msk.bf16.mxu1 %vm3800_vm5, %v3798_v16 }
 0x8ab   : > { %3133 = vmatprep.subr.bf16.mxu1 %v3798_v16 }
 0x8b1   : > { %3130 = vmatmul.mubr.msk.bf16.vlgmr.msra.gmra.mrb[16].mxu1 %vm1258_vm7, %v4385_v7 }
 0x8b2   : > { %3134 = vmatpush3.bf16.msra.mxu1 %v1707_v39  ;;  %3135 = vmatprep.mubr.msk.bf16.mxu1 %vm3800_vm5, %v3798_v16 }
 0x8b3   : > { %3139 = vmatprep.subr.bf16.mxu1 %v3798_v16 }
 0x909   : > { %v1611_v63 = vpop.f32.mrb[12].mxu0 }
 0x90a   : > { %v3125_v1 = vpop.f32.mrb[13].mxu0 }
 0x90b   : > { %v1614_v2 = vpop.f32.mrb[14].mxu0 }
 0x90c   : > { %v3126_v3 = vpop.f32.mrb[15].mxu0 }
 0x97c   : > { %v1544_v4 = vpop.f32.mrb[12].mxu1 }
 0x97d   : > { %v4448_v5 = vadd.f32 %v1611_v63, %v1544_v4  ;;  %v3113_v6 = vpop.f32.mrb[13].mxu1 }
 0x97e   : > { %v1547_v9 = vpop.f32.mrb[14].mxu1 }
 0x97f   : > { %v3114_v10 = vpop.f32.mrb[15].mxu1 }
 0x984   : > { %v1677_v12 = vpop.f32.mrb[16].mxu1 }
 0x985   : > { %v3131_v14 = vpop.f32.mrb[17].mxu1  ;;  %v1683_v7 = vsel %vm1305_vm8, %v1677_v12, -inf }
 0x986   : > { %1684 = vmax.xlane.f32.xlu1 %v1683_v7  ;;  %v1680_v15 = vpop.f32.mrb[18].mxu1  ;;  %v3416_v14 = vld [vmem:[%s4206_s28 + $0x4] ss:$8 sps:$4 sm:$0xff]   ;;  %v3419_v7 = vld [vmem:[%s4206_s28 + $0x14] ss:$8 sps:$4 sm:$0xff]  }
 0x987   : > { %v3132_v17 = vpop.f32.mrb[19].mxu1 }
 0xa13   : > { %v1685_v21 = vpop.xlane.xlu1 %1684 }
 0xa14   : > { %v1686_v22 = vsub.f32 %v1677_v12, %v1685_v21  ;;  %v3414_v12 = vld [vmem:[%s4206_s28] ss:$8 sps:$4 sm:$0xff]  }
 0xa16   : > { %v1687_v23 = vmul.f32 1.442695, %v1686_v22 }
 0xa18   : > { %3466 = vpow2.f32 %v1687_v23 }
 0xa22   : > { %v3467_v25 = vpop.eup %3466 }
 0xa23   : > { %v1689_v26 = vsel %vm1305_vm8, %v3467_v25, 0.0 }
 0xa24   : > { %1690 = vadd.xlane.f32.xlu1 %v1689_v26 }
 0xa35   : > { %1752 = vrot.lane.b32.xlu1 %v1636_v50, %s3802_s24 }
 0xab1   : > { %v1691_v28 = vpop.xlane.xlu1 %1690 }
 0xab2   : > { %3468 = vrcp.f32 %v1691_v28  ;;  %v3422_v28 = vld [vmem:[%s4206_s28 + $0x24] ss:$8 sps:$4 sm:$0xff]  }
 0xab5   : > { %v1753_v31 = vpop.permute.xlu1 %1752 }
 0xab6   : > { %v1758_v33 = vsel %vm1258_vm7, %v1753_v31, 0  ;;  %v3423_v31 = vld [vmem:[%s4206_s28 + $0x30] ss:$8 sps:$4 sm:$0xff]  }
 0xabc   : > { %v3469_v29 = vpop.eup %3468 }
 0xabd   : > { %v1693_v30 = vmul.f32 %v3469_v29, %v3467_v25  ;;  %v3420_v29 = vld [vmem:[%s4206_s28 + $0x20] ss:$8 sps:$4 sm:$0xff]  }
 0xabf   : > { %v1694_v32 = vpack.c.bf16 %v1693_v30, %v1693_v30  ;;  %v3425_v30 = vld [vmem:[%s4206_s28 + $0x34] ss:$8 sps:$4 sm:$0xff]  }
 0xac1   : > { %3136 = vmatmul.mubr.msk.bf16.vlgmr.msra.gmra.mrb[20].mxu1 %vm1318_vm9, %v1694_v32  ;;  %v3428_v32 = vld [vmem:[%s4206_s28 + $0x44] ss:$8 sps:$4 sm:$0xff]  }
 0xac2   : > { %3140 = vmatpush3.bf16.xpose.msra.mxu1 %v1758_v33  ;;  %3141 = vmatprep.mubr.msk.bf16.mxu1 %vm3800_vm5, %v3798_v16  ;;  %v3426_v33 = vld [vmem:[%s4206_s28 + $0x40] ss:$8 sps:$4 sm:$0xff]  }
 0xac3   : > { %3145 = vmatprep.subr.bf16.mxu1 %v3798_v16 }
 0xac9   : > { %3142 = vmatmul.mubr.msk.bf16.vlgmr.msra.gmra.mrb[24].mxu1 %vm1258_vm7, %v1751_v34  ;;  %v3431_v34 = vld [vmem:[%s4206_s28 + $0x54] ss:$8 sps:$4 sm:$0xff]  }
 0xaca   : > { %3147 = vmatprep.mubr.msk.bf16.mxu1 %vm3800_vm5, %v3798_v16 }
 0xb94   : > { %v1743_v35 = vpop.f32.mrb[20].mxu1 }
 0xb95   : > { %v3137_v36 = vpop.f32.mrb[21].mxu1 }
 0xb96   : > { %v1746_v37 = vpop.f32.mrb[22].mxu1  ;;  %v3434_v36 = vld [vmem:[%s4206_s28 + $0x64] ss:$8 sps:$4 sm:$0xff]  }
 0xb97   : > { %v3138_v38 = vpop.f32.mrb[23].mxu1  ;;  %v3432_v37 = vld [vmem:[%s4206_s28 + $0x60] ss:$8 sps:$4 sm:$0xff]  }
 0xb98   : > { %v3437_v38 = vld [vmem:[%s4206_s28 + $0x74] ss:$8 sps:$4 sm:$0xff]  }
 0xb9c   : > { %v1794_v41 = vpop.f32.mrb[24].mxu1 }
 0xb9d   : > { %v3143_v42 = vpop.f32.mrb[25].mxu1  ;;  %v1800_v44 = vsel %vm1305_vm8, %v1794_v41, -inf }
 0xb9e   : > { %1801 = vmax.xlane.f32.xlu1 %v1800_v44  ;;  %v1797_v45 = vpop.f32.mrb[26].mxu1 }
 0xb9f   : > { %v3144_v46 = vpop.f32.mrb[27].mxu1 }
 0xc2b   : > { %v1802_v47 = vpop.xlane.xlu1 %1801 }
 0xc2c   : > { %v1803_v48 = vsub.f32 %v1794_v41, %v1802_v47  ;;  %v3435_v41 = vld [vmem:[%s4206_s28 + $0x70] ss:$8 sps:$4 sm:$0xff]  }
 0xc2e   : > { %v1804_v49 = vmul.f32 1.442695, %v1803_v48 }
 0xc30   : > { %3470 = vpow2.f32 %v1804_v49  ;;  %v1986_v49 = vsub.s32 3, %v4332_v56 }
 0xc3a   : > { %v3471_v50 = vpop.eup %3470 }
 0xc3b   : > { %v1806_v51 = vsel %vm1305_vm8, %v3471_v50, 0.0 }
 0xc3c   : > { %1807 = vadd.xlane.f32.xlu0 %v1806_v51 }
 0xc52   : > { %1812 = vrot.lane.b32.xlu0 %v1702_v40, %s3802_s24 }
 0xcc9   : > { %v1808_v52 = vpop.xlane.xlu0 %1807 }
 0xcca   : > { %3472 = vrcp.f32 %v1808_v52  ;;  %v1987_v52 = vrot.slane %v4338_v58, %v1986_v49 }
 0xccd   : > { %v1813_v53 = vpop.permute.xlu0 %1812 }
 0xcce   : > { %v1818_v54 = vand.u32 %v1813_v53, %v4361_v24  ;;  %v1992_v53 = vsub.s32 4, %v4332_v56 }
 0xcd0   : > { %3146 = vmatpush3.bf16.msra.mxu1 %v1818_v54 }
 0xcd1   : > { %2105 = vmatprep.subr.bf16.mxu1 %v3416_v14  ;;  %v3451_v14 = vld [vmem:[%s4252_s16 + $0x30] sm:$0xff]  }
 0xcd4   : > { %v3473_v55 = vpop.eup %3472 }
 0xcd5   : > { %v1810_v59 = vmul.f32 %v3473_v55, %v3471_v50 }
 0xcd7   : > { %v1811_v60 = vpack.c.bf16 %v1810_v59, %v1810_v59 }
 0xcd9   : > { %3148 = vmatmul.mubr.msk.bf16.vlgmr.msra.gmra.mrb[28].mxu1 %vm1318_vm9, %v1811_v60  ;;  %v1993_v60 = vrot.slane %v4338_v58, %v1992_v53 }
 0xcda   : > { %2137 = vmatprep.mubr.bf16.mxu1 %v3799_v43  ;;  %v1749_v43 = vpack.c.bf16 %v1743_v35, %v1743_v35  ;;  %2106 = vmatpush1.bf16.msra.mxu1 %v3414_v12  ;;  %v3429_v35 = vld [vmem:[%s4206_s28 + $0x50] ss:$8 sps:$4 sm:$0xff]  }
 0xcdb   : > { %2107 = vmatprep.subr.bf16.mxu1 %v3419_v7  ;;  %v3450_v12 = vld [vmem:[%s4252_s16 + $0x70] sm:$0xff]   ;;  %v3452_v7 = vld [vmem:[%s4252_s16 + $0x78] sm:$0xff]  }
 0xdac   : > { %v1854_v61 = vpop.f32.mrb[28].mxu1 }
 0xdad   : > { %v1860_v39 = vpack.c.bf16 %v1854_v61, %v1854_v61  ;;  %v3149_v63 = vpop.f32.mrb[29].mxu1 }
 0xdae   : > { %v1857_v1 = vpop.f32.mrb[30].mxu1 }
 0xdaf   : > { %v3150_v2 = vpop.f32.mrb[31].mxu1  ;;  %3160 = vmatmul.mubr.msk.bf16.vlgmr.msra.gmra.mrb[16].mxu0 %vm1258_vm7, %v1860_v39 }
 0xdb0   : > { %3164 = vmatpush3.bf16.msra.mxu0 %v4391_v18  ;;  %3171 = vmatprep.mubr.msk.bf16.mxu0 %vm3800_vm5, %v3798_v16  ;;  %v3438_v2 = vld [vmem:[%s4252_s16 + $0x40] sm:$0xff]  }
 0xdb1   : > { %3165 = vmatprep.subr.bf16.mxu0 %v3798_v16 }
 0xdb4   : > { %3166 = vmatpush3.bf16.msra.mxu0 %v4395_v19  ;;  %v1957_v19 = vrot.slane %v4338_v58, %v4354_v8 }
 0xdb5   : > { %3167 = vmatprep.subr.bf16.mxu0 %v3798_v16 }
 0xdb8   : > { %3168 = vmatpush3.bf16.msra.mxu0 %v4400_v20 }
 0xdb9   : > { %3169 = vmatprep.subr.bf16.mxu0 %v3798_v16 }
 0xdbc   : > { %3170 = vmatpush3.bf16.msra.mxu0 %v4411_v27 }
 0xdbd   : > { %3025 = vmatprep.subr.bf16.mxu0 %v3438_v2 }
 0xdbf   : > { %3172 = vmatmul.mubr.msk.bf16.vlgmr.msra.gmra.mrb[16].mxu0 %vm1258_vm7, %v1749_v43  ;;  %v3439_v43 = vld [vmem:[%s4252_s16] sm:$0xff]  }
 0xdc0   : > { %3026 = vmatpush3.bf16.msra.mxu0 %v3439_v43 }
 0xe92   : > { %v1941_v24 = vpop.f32.mrb[16].mxu0 }
 0xe93   : > { %v1948_v18 = vrot.slane %v1941_v24, 3  ;;  %v3173_v40 = vpop.f32.mrb[17].mxu0  ;;  %v3440_v24 = vld [vmem:[%s4252_s16 + $0x48] sm:$0xff]  }
 0xe94   : > { %v1944_v3 = vpop.f32.mrb[18].mxu0  ;;  %3027 = vmatprep.subr.bf16.mxu0 %v3440_v24  ;;  %v3443_v40 = vld [vmem:[%s4252_s16 + $0x10] sm:$0xff]  }
 0xe95   : > { %v1951_v20 = vsel %vm1950_vm10, %v4448_v5, %v1948_v18  ;;  %v1953_v16 = vadd.f32 %v1948_v18, %v4277_v11  ;;  %v3174_v27 = vpop.f32.mrb[19].mxu0  ;;  %v3417_v11 = vld [vmem:[%s4206_s28 + $0x10] ss:$8 sps:$4 sm:$0xff]   ;;  %v3441_v18 = vld [vmem:[%s4252_s16 + $0x8] sm:$0xff]  }
 0xe96   : > { %v1952_v6 = vadd.f32 %v1951_v20, %v4281_v13  ;;  %2108 = vmatpush1.bf16.msra.mxu1 %v3417_v11  ;;  %3028 = vmatpush3.bf16.msra.mxu0 %v3441_v18  ;;  %v3444_v3 = vld [vmem:[%s4252_s16 + $0x58] sm:$0xff]   ;;  %v3447_v27 = vld [vmem:[%s4252_s16 + $0x20] sm:$0xff]  }
 0xe97   : > { %v4482_v4 = vadd.f32 %v1957_v19, %v1953_v16  ;;  %2109 = vmatprep.subr.bf16.mxu1 %v3422_v28  ;;  %v3445_v20 = vld [vmem:[%s4252_s16 + $0x18] sm:$0xff]   ;;  %v3446_v16 = vld [vmem:[%s4252_s16 + $0x60] sm:$0xff]  }
 0xe98   : > { %v4487_v10 = vadd.f32 %v1957_v19, %v1952_v6  ;;  %v3442_v19 = vld [vmem:[%s4252_s16 + $0x50] sm:$0xff]   ;;  %v3448_v6 = vld [vmem:[%s4252_s16 + $0x68] sm:$0xff]   ;;  %v3453_v11 = vld [vmem:[%s4252_s16 + $0x38] sm:$0xff]  }
 0xe99   : > { %v1962_v9 = vsel %vm956_vm4, %v4482_v4, 0.0  ;;  %3029 = vmatprep.subr.bf16.mxu0 %v3442_v19 }
 0xe9a   : > { %1963 = vadd.xlane.f32.xlu1 %v1962_v9  ;;  %2110 = vmatpush1.bf16.msra.mxu1 %v3420_v29  ;;  %v3449_v9 = vld [vmem:[%s4252_s16 + $0x28] sm:$0xff]  }
 0xe9b   : > { %2111 = vmatprep.subr.bf16.mxu1 %v3425_v30  ;;  %3030 = vmatpush3.bf16.msra.mxu0 %v3443_v40 }
 0xe9c   : > { %3031 = vmatprep.subr.bf16.mxu0 %v3444_v3 }
 0xe9e   : > { %1960 = vadd.xlane.f32.xlu1 %v4487_v10  ;;  %2112 = vmatpush1.bf16.msra.mxu1 %v3423_v31 }
 0xe9f   : > { %2113 = vmatprep.subr.bf16.mxu1 %v3428_v32  ;;  %3032 = vmatpush3.bf16.msra.mxu0 %v3445_v20 }
 0xea0   : > { %3033 = vmatprep.subr.bf16.mxu0 %v3446_v16 }
 0xea2   : > { %2114 = vmatpush1.bf16.msra.mxu1 %v3426_v33 }
 0xea3   : > { %2115 = vmatprep.subr.bf16.mxu1 %v3431_v34  ;;  %3034 = vmatpush3.bf16.msra.mxu0 %v3447_v27 }
 0xea4   : > { %3035 = vmatprep.subr.bf16.mxu0 %v3448_v6 }
 0xea6   : > { %2116 = vmatpush1.bf16.msra.mxu1 %v3429_v35 }
 0xea7   : > { %2117 = vmatprep.subr.bf16.mxu1 %v3434_v36  ;;  %3036 = vmatpush3.bf16.msra.mxu0 %v3449_v9 }
 0xea8   : > { %3037 = vmatprep.subr.bf16.mxu0 %v3450_v12 }
 0xeaa   : > { %2118 = vmatpush1.bf16.msra.mxu1 %v3432_v37 }
 0xeab   : > { %2119 = vmatprep.subr.bf16.mxu1 %v3437_v38  ;;  %3038 = vmatpush3.bf16.msra.mxu0 %v3451_v14 }
 0xeac   : > { %3039 = vmatprep.subr.bf16.mxu0 %v3452_v7 }
 0xeae   : > { %2120 = vmatpush1.bf16.msra.mxu1 %v3435_v41 }
 0xeaf   : > { %3040 = vmatpush3.bf16.msra.mxu0 %v3453_v11 }
 0xf27   : > { %v1964_v13 = vpop.xlane.xlu1 %1963 }
 0xf28   : > { %v1966_v5 = vmul.f32 0.0078125, %v1964_v13  ;;  %v2013_v13 = vld [vmem:[%s4245_s17] sm:$0x3]  ;;  %s4757_s17 = sld [smem:[#allocation21_spill]] }
 0xf2a   : > { %v1968_v21 = vsub.f32 %v4482_v4, %v1966_v5  ;;  %v2018_v5 = vrot.slane %v2013_v13, %v4335_v57 }
 0xf2b   : > { %v1961_v15 = vpop.xlane.xlu1 %1960 }
 0xf2c   : > { %v1965_v17 = vmul.f32 0.0078125, %v1961_v15  ;;  %v1970_v25 = vmul.f32 %v1968_v21, %v1968_v21  ;;  %v2022_v15 = vrot.slane %v2013_v13, %v4344_v62 }
 0xf2e   : > { %v1967_v22 = vsub.f32 %v4487_v10, %v1965_v17  ;;  %v1973_v26 = vsel %vm956_vm4, %v1970_v25, 0.0  ;;  %p2955_p4 = scmp.ne.s32.totalorder %s4757_s17, 1 }
 0xf2f   : > { %vm2372_vm11 = vcmask (!%p2955_p4), 1040384   ;;  %s4758_s18 = sld [smem:[#allocation40_spill]] (!%p2955_p4)  ;;  %v3803_v6 = vmov (!%p2955_p4), 0.0   ;;  %vm3804_vm12 = vmmov (!%p2955_p4), 0   ;;  %s4760_s21 = sld [smem:[#allocation41_spill]] (!%p2955_p4)  ;;  %vm2528_vm13 = vcmask (!%p2955_p4), 261120  }
 0xf30   : > { %v1969_v23 = vmul.f32 %v1967_v22, %v1967_v22  ;;  %3175 = vmatprep.subr.bf16.mxu0 (!%p2955_p4), %v3803_v6  ;;  %3195 = vmatprep.subr.bf16.mxu1 (!%p2955_p4), %v3803_v6 }
 0xf32   : > { %1971 = vadd.xlane.f32.xlu1 %v1969_v23 }
 0xf35   : > { %s4759_s6 = smov (!%p2955_p4), %s4758_s18  ;;  %s4761_s25 = smov (!%p2955_p4), %s4760_s21 }
 0xf36   : > { %1974 = vadd.xlane.f32.xlu1 %v1973_v26  ;;  %v3495_v9 = vld [vmem:[%s4759_s6 + $0x8] sm:$0xff] (!%p2955_p4)  }
 0xfbf   : > { %v1972_v42 = vpop.xlane.xlu1 %1971 }
 0xfc0   : > { %v1976_v44 = vmul.f32 0.0078125, %v1972_v42 }
 0xfc2   : > { %v1978_v45 = vadd.f32 1e-05, %v1976_v44 }
 0xfc3   : > { %v1975_v46 = vpop.xlane.xlu1 %1974 }
 0xfc4   : > { %3474 = vrsqrt.f32 %v1978_v45  ;;  %v1977_v47 = vmul.f32 0.0078125, %v1975_v46 }
 0xfc6   : > { %v1979_v48 = vadd.f32 1e-05, %v1977_v47 }
 0xfc8   : > { %3476 = vrsqrt.f32 %v1979_v48 }
 0xfce   : > { %v3475_v50 = vpop.eup %3474 }
 0xfcf   : > { %v1982_v51 = vmul.f32 %v3475_v50, %v1967_v22 }
 0xfd1   : > { %v1988_v59 = vmul.f32 %v1987_v52, %v1982_v51 }
 0xfd2   : > { %v3477_v54 = vpop.eup %3476 }
 0xfd3   : > { %v1983_v55 = vmul.f32 %v3477_v54, %v1968_v21  ;;  %v1994_v39 = vadd.f32 %v1993_v60, %v1988_v59 }
 0xfd5   : > { %v1989_v61 = vmul.f32 %v1987_v52, %v1983_v55 }
 0xfd7   : > { %v1995_v63 = vadd.f32 %v1993_v60, %v1989_v61 }
 0xfd9   : > { %v1996_v1 = vpack.c.bf16 %v1995_v63, %v1994_v39  ;;  %v2355_v39 = vsub.s32 5, %v4332_v56 }
 0xfdb   : > { %2138 = vmatmul.mubr.bf16.vlgmr.msra.gmra.mrb[32].mxu1 %v1996_v1  ;;  %v2356_v43 = vrot.slane %v4338_v58, %v2355_v39 }
 0xfdc   : > { %3199 = vmatprep.mubr.msk.bf16.mxu1 (!%p2955_p4), %vm3804_vm12, %v3803_v6 }
0x10ae   : > { %v2139_v17 = vpop.f32.mrb[32].mxu1 }
0x10af   : > { %v2140_v21 = vadd.f32 %v2139_v17, %v2018_v5  ;;  %v2141_v22 = vpop.f32.mrb[33].mxu1  ;;  %v3498_v17 = vld [vmem:[%s4759_s6 + $0x20] sm:$0xff] (!%p2955_p4)  }
0x10b0   : > { %v2142_v23 = vadd.f32 %v2141_v22, %v2022_v15  ;;  %v2143_v25 = vpop.f32.mrb[34].mxu1  ;;  %v3500_v22 = vld [vmem:[%s4759_s6 + $0x30] sm:$0xff] (!%p2955_p4)  }
0x10b1   : > { %v2935_v26 = vmul.f32 -1.702, %v2140_v21  ;;  %v2144_v28 = vadd.f32 %v2143_v25, %v2018_v5  ;;  %v2145_v29 = vpop.f32.mrb[35].mxu1  ;;  %v3496_v5 = vld [vmem:[%s4759_s6 + $0x10] sm:$0xff] (!%p2955_p4)  }
0x10b2   : > { %v2936_v30 = vmul.f32 -1.702, %v2142_v23  ;;  %v2146_v31 = vadd.f32 %v2145_v29, %v2022_v15  ;;  %v3497_v15 = vld [vmem:[%s4759_s6 + $0x18] sm:$0xff] (!%p2955_p4)   ;;  %v2390_v29 = vrot.slane (!%p2955_p4), %v4230_v0, %v4354_v8  ;;  %v3503_v8 = vld [vmem:[%s4761_s25 + $0x8] sm:$0xff] (!%p2955_p4)  }
0x10b3   : > { %v2156_v32 = vmul.f32 1.442695, %v2935_v26  ;;  %v2937_v33 = vmul.f32 -1.702, %v2144_v28 }
0x10b4   : > { %v2158_v34 = vmul.f32 1.442695, %v2936_v30  ;;  %v2938_v35 = vmul.f32 -1.702, %v2146_v31 }
0x10b5   : > { %3478 = vpow2.f32 %v2156_v32  ;;  %v2160_v36 = vmul.f32 1.442695, %v2937_v33  ;;  %v2395_v32 = vrot.slane (!%p2955_p4), %v4230_v0, %v1986_v49 }
0x10b6   : > { %3480 = vpow2.f32 %v2158_v34  ;;  %v2162_v57 = vmul.f32 1.442695, %v2938_v35 }
0x10b7   : > { %3482 = vpow2.f32 %v2160_v36  ;;  %v3502_v36 = vld [vmem:[%s4760_s21] sm:$0xff] (!%p2955_p4)  }
0x10b8   : > { %3484 = vpow2.f32 %v2162_v57  ;;  %3196 = vmatpush3.bf16.msra.mxu1 (!%p2955_p4), %v3502_v36  ;;  %v2417_v57 = vrot.slane (!%p2955_p4), %v4230_v0, %v2355_v39 }
0x10b9   : > { %3197 = vmatprep.subr.bf16.mxu1 (!%p2955_p4), %v3803_v6 }
0x10bc   : > { %3198 = vmatpush3.bf16.msra.mxu1 (!%p2955_p4), %v3503_v8 }
0x10bf   : > { %v3479_v62 = vpop.eup %3478 }
0x10c0   : > { %v3481_v37 = vpop.eup %3480  ;;  %v2164_v38 = vadd.f32 1.0, %v3479_v62 }
0x10c1   : > { %v3483_v41 = vpop.eup %3482  ;;  %v2165_v42 = vadd.f32 1.0, %v3481_v37 }
0x10c2   : > { %v3485_v44 = vpop.eup %3484  ;;  %3486 = vrcp.f32 %v2164_v38  ;;  %v2166_v45 = vadd.f32 1.0, %v3483_v41 }
0x10c3   : > { %3488 = vrcp.f32 %v2165_v42  ;;  %v2167_v46 = vadd.f32 1.0, %v3485_v44 }
0x10c4   : > { %3490 = vrcp.f32 %v2166_v45  ;;  %v2515_v45 = vrot.slane (!%p2955_p4), %v4230_v0, %v1992_v53 }
0x10c5   : > { %3492 = vrcp.f32 %v2167_v46 }
0x10cc   : > { %v3487_v47 = vpop.eup %3486 }
0x10cd   : > { %v3489_v48 = vpop.eup %3488  ;;  %v2176_v52 = vmul.f32 %v3487_v47, %v2140_v21  ;;  %v3499_v21 = vld [vmem:[%s4759_s6 + $0x28] sm:$0xff] (!%p2955_p4)  }
0x10ce   : > { %v3491_v50 = vpop.eup %3490  ;;  %v2177_v55 = vmul.f32 %v3489_v48, %v2142_v23  ;;  %v3501_v23 = vld [vmem:[%s4759_s6 + $0x38] sm:$0xff] (!%p2955_p4)  }
0x10cf   : > { %v3493_v51 = vpop.eup %3492  ;;  %v2178_v54 = vmul.f32 %v3491_v50, %v2144_v28 }
0x10d0   : > { %v2179_v59 = vmul.f32 %v3493_v51, %v2146_v31 }
0x10d1   : > { %v2180_v60 = vpack.c.bf16 %v2178_v54, %v2176_v52 }
0x10d2   : > { %v2181_v61 = vpack.c.bf16 %v2179_v59, %v2177_v55 }
0x10d4   : > { %2342 = vmatprep.mubr.bf16.mxu0 %v2181_v61 }
0x10d5   : > { %2343 = vmatmul.mubr.bf16.vlgmr.msra.gmra.mrb[20].mxu0 %v2180_v60 }
0x10d6   : > { %3191 = vmatprep.mubr.msk.bf16.mxu0 (!%p2955_p4), %vm3804_vm12, %v3803_v6 }
0x11a8   : > { %v3041_v63 = vpop.f32.mrb[20].mxu0 }
0x11a9   : > { %v3042_v1 = vpop.f32.mrb[21].mxu0 }
0x11aa   : > { %v3043_v2 = vadd.f32 %v3042_v1, %v3041_v63  ;;  %v3044_v24 = vpop.f32.mrb[22].mxu0 }
0x11ab   : > { %v3045_v18 = vpop.f32.mrb[23].mxu0 }
0x11ac   : > { %v2351_v19 = vadd.f32 %v3043_v2, %v4487_v10  ;;  %v3046_v40 = vadd.f32 %v3045_v18, %v3044_v24  ;;  %2364 = sbr.rel (%p2955_p4) target bundleno = 5285 (0x14a5), region = 100 }
0x11ae   : > { %v2357_v3 = vadd.f32 %v2356_v43, %v2351_v19  ;;  %v2352_v20 = vadd.f32 %v3046_v40, %v4482_v4  ;;  %v3494_v4 = vld [vmem:[%s4758_s18] sm:$0xff] (!%p2955_p4)  }
0x11af   : > { %3176 = vmatpush3.bf16.msra.mxu0 (!%p2955_p4), %v3494_v4 }
0x11b0   : > { %2359 = vst [vmem:[#allocation2] sm:$0xff] %v2357_v3  ;;  %v2358_v16 = vadd.f32 %v2356_v43, %v2352_v20  ;;  %v2370_v27 = vrot.slane (!%p2955_p4), %v2357_v3, 4  ;;  %2365 = vst [vmem:[%s4250_s22] sm:$0x1f] (!%p2955_p4), %v2357_v3  ;;  %3177 = vmatprep.subr.bf16.mxu0 (!%p2955_p4), %v3803_v6 }
0x11b1   : > { %2956 = vst [vmem:[%s4250_s22 + $0x3] sm:$0xe0] (!%p2955_p4), %v2357_v3 }
0x11b2   : > { %2360 = vst [vmem:[#allocation2 + $0x8] sm:$0x3] %v2358_v16  ;;  %2957 = vst [vmem:[%s4250_s22 + $0xb] sm:$0x3] (!%p2955_p4), %v2358_v16  ;;  %v2373_v58 = vsel (!%p2955_p4), %vm2372_vm11, %v2357_v3, %v2370_v27 }
0x11b3   : > { %v2374_v10 = vsel %vm956_vm4, %v2373_v58, 0.0  ;;  %3178 = vmatpush3.bf16.msra.mxu0 %v3495_v9 }
0x11b4   : > { %2375 = vadd.xlane.f32.xlu0 %v2374_v10  ;;  %3179 = vmatprep.subr.bf16.mxu0 %v3803_v6 }
0x11b7   : > { %3180 = vmatpush3.bf16.msra.mxu0 %v3496_v5 }
0x11b8   : > { %3181 = vmatprep.subr.bf16.mxu0 %v3803_v6 }
0x11bb   : > { %3182 = vmatpush3.bf16.msra.mxu0 %v3497_v15 }
0x11bc   : > { %3183 = vmatprep.subr.bf16.mxu0 %v3803_v6 }
0x11bf   : > { %3184 = vmatpush3.bf16.msra.mxu0 %v3498_v17 }
0x11c0   : > { %3185 = vmatprep.subr.bf16.mxu0 %v3803_v6 }
0x11c3   : > { %3186 = vmatpush3.bf16.msra.mxu0 %v3499_v21 }
0x11c4   : > { %3187 = vmatprep.subr.bf16.mxu0 %v3803_v6 }
0x11c7   : > { %3188 = vmatpush3.bf16.msra.mxu0 %v3500_v22 }
0x11c8   : > { %3189 = vmatprep.subr.bf16.mxu0 %v3803_v6 }
0x11cb   : > { %3190 = vmatpush3.bf16.msra.mxu0 %v3501_v23 }
0x1241   : > { %v2376_v12 = vpop.xlane.xlu0 %2375 }
0x1242   : > { %v2377_v14 = vmul.f32 0.0078125, %v2376_v12 }
0x1244   : > { %v2378_v7 = vsub.f32 %v2373_v58, %v2377_v14 }
0x1246   : > { %v2379_v11 = vmul.f32 %v2378_v7, %v2378_v7 }
0x1248   : > { %v2380_v13 = vsel %vm956_vm4, %v2379_v11, 0.0 }
0x1249   : > { %2381 = vadd.xlane.f32.xlu0 %v2380_v13 }
0x12d6   : > { %v2382_v25 = vpop.xlane.xlu0 %2381 }
0x12d7   : > { %v2383_v26 = vmul.f32 0.0078125, %v2382_v25 }
0x12d9   : > { %v2384_v28 = vadd.f32 1e-05, %v2383_v26 }
0x12db   : > { %3504 = vrsqrt.f32 %v2384_v28 }
0x12e5   : > { %v3505_v30 = vpop.eup %3504 }
0x12e6   : > { %v2386_v31 = vmul.f32 %v3505_v30, %v2378_v7 }
0x12e8   : > { %v2391_v33 = vmul.f32 %v2390_v29, %v2386_v31 }
0x12ea   : > { %v2396_v34 = vadd.f32 %v2395_v32, %v2391_v33 }
0x12ec   : > { %v2397_v35 = vpack.c.bf16 %v2396_v34, %v2396_v34  ;;  %v2574_v55 = vmul.f32 0.8, %v2396_v34 }
0x12ee   : > { %3192 = vmatmul.mubr.bf16.vlgmr.msra.gmra.mrb[0].mxu0 %v2397_v35 }
0x13c1   : > { %v2500_v49 = vpop.f32.mrb[0].mxu0 }
0x13c2   : > { %v2501_v62 = vadd.f32 %v2500_v49, %v2417_v57  ;;  %v3193_v37 = vpop.f32.mrb[1].mxu0 }
0x13c3   : > { %v2503_v38 = vpop.f32.mrb[2].mxu0 }
0x13c4   : > { %v2506_v41 = vmax.f32 %v2501_v62, 0.0  ;;  %v3194_v42 = vpop.f32.mrb[3].mxu0 }
0x13c6   : > { %v2507_v44 = vpack.c.bf16 %v2506_v41, %v2506_v41 }
0x13c8   : > { %3200 = vmatmul.mubr.msk.bf16.vlgmr.msra.gmra.mrb[0].mxu1 %vm2528_vm13, %v2507_v44 }
0x149b   : > { %v2566_v46 = vpop.f32.mrb[0].mxu1 }
0x149c   : > { %v2567_v47 = vadd.f32 %v2566_v46, %v2515_v45  ;;  %v3201_v48 = vpop.f32.mrb[1].mxu1 }
0x149d   : > { %v2569_v50 = vpop.f32.mrb[2].mxu1 }
0x149e   : > { %v2572_v51 = vmax.f32 %v2567_v47, 0.0  ;;  %v3202_v52 = vpop.f32.mrb[3].mxu1 }
0x14a0   : > { %v2573_v54 = vmul.f32 0.2, %v2572_v51 }
0x14a2   : > { %v2575_v59 = vadd.f32 %v2574_v55, %v2573_v54 }
0x14a4   : > { %2576 = vst [vmem:[%s688_s12] sm:$0x3] %v2575_v59  }
0x14a5 PF: > { %s2979_s27 = sshll.u32 %s3772_s20, 5  ;;  %s4762_s19 = sld [smem:[#allocation43_spill]] }
0x14a6   : > { %s2602_s8 = sshll.u32 %s688_s12, 4  ;;  %s4764_s26 = sand.u32 1, %s3748_s30   ;;  %s4599_s8 = int_to_ptr.vmem [resolvable:$true] %s2602_s8 }
0x14a7   : > { %s4603_s15 = scalar_lea.sflag [#allocation5], %s4764_s26  ;;  %s3654_s5 = scalar_lea.vmem %s4599_s8, 32 }
0x14a8   : > { %p3655_p12 = scmp.ne.s32.totalorder %s4599_s8, %s3654_s5  ;;  %p4765_p3 = scmp.ne.s32.totalorder %s4736_s11, 0 }
0x14a9   : > { %s3805_s20 = smov [#allocation12]  }
0x14aa   : > { %p3656_p1 = pnand %p3655_p12, %p4765_p3  ;;  %s3658_s4 = sshll.u32 %s3805_s20, 4  ;;  %s3659_s4 = int_to_ptr.vmem [resolvable:$false] %s3658_s4 }
0x14ab   : > { %s4763_s9 = smov %s4762_s19  ;;  %s4595_s14 = scalar_lea.hbm %s4762_s19, %s2979_s27 }
0x14ac   : > { %p3657_p13 = pneg %p3656_p1  ;;  %s3660_s13 = scalar_lea.vmem %s3659_s4, 64 }
0x14ad   : > { %p3661_p11 = scmp.lt.s32.totalorder %s4599_s8, %s3659_s4  ;;  %p3662_p9 = scmp.lt.s32.totalorder %s3660_s13, %s3654_s5 }
0x14af   : > { %p3663_p10 = por %p3662_p9, %p3661_p11 }
0x14b1   : > { %p3664_p8 = pnand %p3663_p10, %p3657_p13 }
0x14b3   : > { %3667 = shalt.err (!%p3664_p8)
}
0x14b4   : > { %s3668_s2 = scalar_lea.hbm %s4595_s14, 32  ;;  %s3672_s22 = scalar_lea.hbm %s4763_s9, 64 }
0x14b5   : > { %p3669_p5 = scmp.ne.s32.totalorder %s4595_s14, %s3668_s2  ;;  %p3673_p6 = scmp.lt.u32.totalorder %s4595_s14, %s4763_s9 }
0x14b6   : > { %p3674_p7 = scmp.lt.u32.totalorder %s3672_s22, %s3668_s2  ;;  %p3676_p12 = scmp.lt.u32.totalorder %s3668_s2, %s4595_s14 }
0x14b7   : > { %p3670_p0 = pnand %p3669_p5, %p4765_p3 }
0x14b8   : > { %p3675_p4 = por %p3674_p7, %p3673_p6 }
0x14b9   : > { %p3671_p2 = pneg %p3670_p0 }
0x14ba   : > { %p3677_p1 = por %p3676_p12, %p3675_p4 }
0x14bc   : > { %p3678_p13 = pnand %p3677_p1, %p3671_p2 }
0x14be   : > { %3681 = shalt.err (!%p3678_p13)
}
0x14bf   : > { %s3806_s7 = smov 16   ;;  %s3807_s0 = smov 1  }
0x14c0   : > { %3224 = dma.vmem_to_hbm [thread:$0]  (%p4765_p3), %s4599_s8, 32, %s4595_s14, %s4603_s15, %s3806_s7, %s3806_s7, %s3807_s0  }
0x14c1 PF: > { %s4766_s29 = sld [smem:[#allocation17_spill]]  ;;  %s4767_s21 = sld [smem:[#allocation28_spill]] }
0x14c2   : > { %p3250_p11 = scmp.ge.s32.totalorder %s3784_s23, 2 }
0x14c7   : > { %s2625_s24 = sand.u32 1, %s4766_s29   ;;  %p4768_p9 = scmp.ne.s32.totalorder %s4767_s21, 0 }
0x14c8   : > { %s2626_s17 = scalar_lea.sflag [#allocation5], %s2625_s24 }
0x14c9   : > { %p3244_p10 = pnand %p3250_p11, %p4768_p9 }
0x14cb   : > { %3739 = dma.done.wait (!%p3244_p10), %s2626_s17, 32  }
0x14cc   : > { %3741 = vsyncadd (!%p3244_p10), %s2626_s17, 4294967264  ;;  %s35_s23 = sadd.s32 1, %s3784_s23   ;;  %s4769_s27 = sld [smem:[#allocation18_spill]] }
0x14cd   : > { %p32_p8 = scmp.ge.s32.totalorder %s35_s23, 6   ;;  %s4770_s15 = sld [smem:[#allocation27_spill]] }
0x14ce   : > { %s4771_s16 = sld [smem:[#allocation19_spill]]  ;;  %s4772_s17 = sld [smem:[#allocation20_spill]] }
0x14cf   : > { %s4773_s18 = sld [smem:[#allocation26_spill]]  ;;  %s4774_s19 = sld [smem:[#allocation22_spill]] }
0x14d0   : > { %s4775_s20 = sld [smem:[#allocation23_spill]]  ;;  %s4776_s21 = sld [smem:[#allocation24_spill]] }
0x14d1   : > { %s4777_s22 = sld [smem:[#allocation25_spill]]  ;;  %s4778_s29 = smov %s3748_s30 }
0x14d2   : > { %s4779_s30 = smov %s4769_s27  ;;  %34 = sbr.rel (!%p32_p8) target bundleno = 28 (0x1c), region = 191 }
0x14d9   :  { %2631 = vsyncpa [#allocation4], 1 }
0x14da   :  { %2633 = vsyncpa [#allocation4 + $0x1], 1 }
0x14db   :  { %2634 = vsyncpa [#allocation7], 1 }
0x14dc   :  { %2636 = vsyncpa [#allocation7 + $0x1], 1 }
0x14dd   :  { %2637 = vsyncpa [#allocation10], 1 }
0x14de   :  { %2639 = vsyncpa [#allocation10 + $0x1], 1 }
0x14df   :  { %2640 = vsyncpa [#allocation5], 1 }
0x14e0   :  { %2642 = vsyncpa [#allocation5 + $0x1], 1 }

</bundles_post_ra>
